<compile_context>
chip_gen: v6e
topology: v6e:2x2x1
jax: 0.10.0
libtpu: 0.0.40
codegen_flags: <defaults>
</compile_context>

<pallas_src>
import jax
import jax.numpy as jnp
from jax import lax
from jax.experimental import pallas as pl
from jax.experimental.pallas import tpu as pltpu


# ---------------------------------------------------------------------------
# helpers
# ---------------------------------------------------------------------------
def _round_up(x, m):
    return ((x + m - 1) // m) * m


def _pad_to(a, shape):
    pads = [(0, s - d) for d, s in zip(a.shape, shape)]
    if all(p == (0, 0) for p in pads):
        return a
    return jnp.pad(a, pads)


def _vmem_limit(needed_bytes):
    # Headroom over the computed footprint, capped under v7x's 64 MiB physical.
    return int(min(max(needed_bytes + (4 << 20), 16 << 20), 48 << 20))


# ---------------------------------------------------------------------------
# Kernel 1: tiled linear  out = x @ w + b   (bf16 operands, f32 accumulation)
# ---------------------------------------------------------------------------
def linear_kernel(x_ref, w_ref, b_ref, o_ref):
    acc = jnp.dot(x_ref[...], w_ref[...], preferred_element_type=jnp.float32)
    o_ref[...] = (acc + b_ref[...]).astype(o_ref.dtype)


def run_linear(x, w, b, *, row_tile=512, col_tile=1024, out_dtype=jnp.float32):
    """x: (N, K) bf16, w: (K, V) bf16, b: (1, V) f32 -> (N, V) out_dtype.

    Rows/cols are padded internally up to the tile size (full, lane-dense
    128-aligned tiles; no divisor-search collapse) and sliced back.
    """
    N, K = x.shape
    V = w.shape[1]
    tn = min(row_tile, _round_up(N, 8))
    tv = min(col_tile, _round_up(V, 128))
    Np = _round_up(N, tn)
    Vp = _round_up(V, tv)
    x_p = _pad_to(x, (Np, K))
    w_p = _pad_to(w, (K, Vp))
    b_p = _pad_to(b, (1, Vp))
    grid_rows = Np // tn
    grid_cols = Vp // tv

    # Keep the operand whose re-streaming would cost more HBM traffic resident
    # across the inner grid axis (big-vocab logits matmul: keep W_out resident).
    w_restream = grid_rows * K * Vp * w_p.dtype.itemsize
    x_restream = grid_cols * Np * K * x_p.dtype.itemsize
    rows_outer = w_restream <= x_restream

    if rows_outer:
        grid = (grid_rows, grid_cols)
        x_spec = pl.BlockSpec((tn, K), lambda i, j: (i, 0))
        w_spec = pl.BlockSpec((K, tv), lambda i, j: (0, j))
        b_spec = pl.BlockSpec((1, tv), lambda i, j: (0, j))
        o_spec = pl.BlockSpec((tn, tv), lambda i, j: (i, j))
    else:
        grid = (grid_cols, grid_rows)
        x_spec = pl.BlockSpec((tn, K), lambda j, i: (i, 0))
        w_spec = pl.BlockSpec((K, tv), lambda j, i: (0, j))
        b_spec = pl.BlockSpec((1, tv), lambda j, i: (0, j))
        o_spec = pl.BlockSpec((tn, tv), lambda j, i: (i, j))

    out_itemsize = jnp.dtype(out_dtype).itemsize
    flops = 2 * Np * K * Vp
    bytes_accessed = (x_p.size * x_p.dtype.itemsize + w_p.size * w_p.dtype.itemsize
                      + b_p.size * b_p.dtype.itemsize + Np * Vp * out_itemsize)
    needed = 2 * (tn * K * x_p.dtype.itemsize + K * tv * w_p.dtype.itemsize
                  + tv * 4 + tn * tv * out_itemsize)

    # TODO(synk): for very large K add a K grid axis + f32 VMEM accumulator.
    out = pl.pallas_call(
        linear_kernel,
        out_shape=jax.ShapeDtypeStruct((Np, Vp), out_dtype),
        grid=grid,
        in_specs=[x_spec, w_spec, b_spec],
        out_specs=o_spec,
        compiler_params=pltpu.CompilerParams(
            dimension_semantics=("parallel", "parallel"),
            vmem_limit_bytes=_vmem_limit(needed)),
        cost_estimate=pl.CostEstimate(
            flops=flops, transcendentals=0, bytes_accessed=bytes_accessed),
    )(x_p, w_p, b_p)
    return out[:N, :V]


# ---------------------------------------------------------------------------
# Kernel 2: vanilla RNN recurrence with pre-projected inputs
#   h_t = tanh(Xp[t] + h_{t-1} @ W_hh),  Xp already includes x @ W_ih + bias.
# Grid = (batch tiles ["parallel"], time chunks ["arbitrary", innermost]).
# h is carried across time chunks in a persistent VMEM scratch.
# ---------------------------------------------------------------------------
def _make_rnn_kernel(split_streams):
    def rnn_kernel(xp_ref, w_hh_ref, out_ref, h_ref):
        @pl.when(pl.program_id(1) == 0)
        def _init():
            h_ref[...] = jnp.zeros_like(h_ref)

        w_hh = w_hh_ref[...]                       # (Hp, Hp) bf16, loaded once per chunk
        t_chunk = xp_ref.shape[0]
        bb = h_ref.shape[0]

        if split_streams:
            half = bb // 2

            def step(t, carry):
                ha, hb = carry
                x_t = xp_ref[t]                    # (bb, Hp) bf16
                xa = x_t[:half].astype(jnp.float32)
                xb = x_t[half:].astype(jnp.float32)
                # Two independent half-streams: stream B's matmul (MXU) can
                # overlap stream A's tanh (EUP).
                pa = xa + jnp.dot(ha.astype(jnp.bfloat16), w_hh,
                                  preferred_element_type=jnp.float32)
                pb = xb + jnp.dot(hb.astype(jnp.bfloat16), w_hh,
                                  preferred_element_type=jnp.float32)
                ha_n = jnp.tanh(pa)
                hb_n = jnp.tanh(pb)
                out_ref[t] = jnp.concatenate([ha_n, hb_n], axis=0).astype(out_ref.dtype)
                return ha_n, hb_n

            ha, hb = lax.fori_loop(0, t_chunk, step,
                                   (h_ref[:half], h_ref[half:]), unroll=True)
            h_ref[:half] = ha
            h_ref[half:] = hb
        else:
            def step(t, h):
                pre = xp_ref[t].astype(jnp.float32) + jnp.dot(
                    h.astype(jnp.bfloat16), w_hh,
                    preferred_element_type=jnp.float32)
                h_new = jnp.tanh(pre)
                out_ref[t] = h_new.astype(out_ref.dtype)
                return h_new

            h_ref[...] = lax.fori_loop(0, t_chunk, step, h_ref[...], unroll=True)

    return rnn_kernel


def run_rnn(xp_tbh, w_hh_bf16, *, batch_tile=256, time_tile=8):
    """xp_tbh: (T, Bp, Hp) bf16 pre-projected inputs. Returns (T, Bp, Hp) bf16."""
    T, Bp, Hp = xp_tbh.shape
    bb = min(batch_tile, _round_up(Bp, 8))
    # v7x megacore: prefer >= 2 batch blocks so both TensorCores get work.
    if _round_up(Bp, bb) == bb and bb >= 32:
        bb = _round_up(bb // 2, 16)
    Bpp = _round_up(Bp, bb)
    tT = min(time_tile, T)
    Tp = _round_up(T, tT)
    xp = _pad_to(xp_tbh, (Tp, Bpp, Hp))

    # Half-stream MXU/EUP interleave needs sublane-aligned halves.
    split_streams = (bb >= 16) and (bb % 16 == 0)

    flops = 2 * Tp * Bpp * Hp * Hp
    transcendentals = Tp * Bpp * Hp
    bytes_accessed = (xp.size * xp.dtype.itemsize + Hp * Hp * 2 + Tp * Bpp * Hp * 2)
    needed = (2 * tT * bb * Hp * xp.dtype.itemsize      # Xp chunk, double-buffered
              + 2 * tT * bb * Hp * 2                    # out chunk (bf16), double-buffered
              + 2 * Hp * Hp * 2                         # W_hh (bf16)
              + bb * Hp * 4)                            # h scratch (f32)

    out = pl.pallas_call(
        _make_rnn_kernel(split_streams),
        out_shape=jax.ShapeDtypeStruct((Tp, Bpp, Hp), jnp.bfloat16),
        grid=(Bpp // bb, Tp // tT),
        in_specs=[
            pl.BlockSpec((tT, bb, Hp), lambda i, t: (t, i, 0)),
            pl.BlockSpec((Hp, Hp), lambda i, t: (0, 0)),
        ],
        out_specs=pl.BlockSpec((tT, bb, Hp), lambda i, t: (t, i, 0)),
        scratch_shapes=[pltpu.VMEM((bb, Hp), jnp.float32)],
        compiler_params=pltpu.CompilerParams(
            dimension_semantics=("parallel", "arbitrary"),
            vmem_limit_bytes=_vmem_limit(needed)),
        cost_estimate=pl.CostEstimate(
            flops=flops, transcendentals=transcendentals,
            bytes_accessed=bytes_accessed),
    )(xp, w_hh_bf16)
    return out[:T, :Bp, :]


# ---------------------------------------------------------------------------
# Full forward
# ---------------------------------------------------------------------------
def lm_rnn_forward(ids, params):
    emb_table = params["emb_table"]          # (V, E), row pad_index is zero
    w_ih = params["w_ih"]                    # (E, H)
    w_hh = params["w_hh"]                    # (H, H)
    b_rnn = params["b_rnn"]                  # (1, H)  (= b_ih + b_hh)
    w_out = params["w_out"]                  # (H, V)
    b_out = params["b_out"]                  # (1, V)

    B, T = ids.shape
    V, E = emb_table.shape
    H = w_hh.shape[0]

    Bp = _round_up(B, 8)
    Hp = _round_up(H, 128)

    # Embedding gather, produced time-major directly (single transpose overall).
    emb_tbe = jnp.take(emb_table, ids.T, axis=0)             # (T, B, E)
    emb_tbe = _pad_to(emb_tbe, (T, Bp, E))                    # (T, Bp, E)

    # Zero padding is semantics-preserving: padded hidden units keep Xp = 0 and
    # zero W_hh rows/cols, so they stay exactly 0 through tanh; padded batch
    # rows / vocab cols are sliced off.
    w_ih_p = _pad_to(w_ih, (E, Hp)).astype(jnp.bfloat16)
    w_hh_p = _pad_to(w_hh, (Hp, Hp)).astype(jnp.bfloat16)     # bf16 on the host side
    b_rnn_p = _pad_to(b_rnn, (1, Hp))
    w_out_p = _pad_to(w_out, (Hp, V)).astype(jnp.bfloat16)

    # (1) Hoisted input projection + bias as one lane-dense matmul, stored bf16.
    x_flat = emb_tbe.reshape(T * Bp, E).astype(jnp.bfloat16)
    xp = run_linear(x_flat, w_ih_p, b_rnn_p, out_dtype=jnp.bfloat16)  # (T*Bp, Hp)
    xp = xp.reshape(T, Bp, Hp)

    # (2) Time-chunked recurrence with persistent VMEM hidden state.
    rnn_tbh = run_rnn(xp, w_hh_p)                             # (T, Bp, Hp) bf16

    # (3) Vocab projection; grid order keeps W_out resident for large vocab.
    logits = run_linear(rnn_tbh.reshape(T * Bp, Hp), w_out_p, b_out,
                        out_dtype=jnp.float32)                # (T*Bp, V) f32
    logits = logits.reshape(T, Bp, V)[:, :B, :]               # (T, B, V)
    # Single layout permute at the very end: (T, B, V) -> (B, V, T).
    # TODO(synk): for T >= 128 write the vocab projection directly in (B, V, T)
    # layout (T on lanes) to drop this XLA transpose.
    return jnp.transpose(logits, (1, 2, 0))


def init_params(key, vocab_size, emb_size, hidden_size, pad_index=0):
    k_emb, k_ih, k_hh, k_bih, k_bhh, k_w, k_b = jax.random.split(key, 7)
    emb_table = jax.random.normal(k_emb, (vocab_size, emb_size), jnp.float32)
    emb_table = emb_table.at[pad_index].set(0.0)  # padding_idx row is zero

    bound = 1.0 / float(jnp.sqrt(hidden_size))
    # Stored pre-transposed: PyTorch weight_ih_l0 is (H, E); we keep (E, H).
    w_ih = jax.random.uniform(k_ih, (emb_size, hidden_size), jnp.float32, -bound, bound)
    w_hh = jax.random.uniform(k_hh, (hidden_size, hidden_size), jnp.float32, -bound, bound)
    b_ih = jax.random.uniform(k_bih, (hidden_size,), jnp.float32, -bound, bound)
    b_hh = jax.random.uniform(k_bhh, (hidden_size,), jnp.float32, -bound, bound)
    b_rnn = (b_ih + b_hh).reshape(1, hidden_size)

    # Linear(hidden, vocab): PyTorch weight is (V, H); we keep (H, V).
    w_out = jax.random.uniform(k_w, (hidden_size, vocab_size), jnp.float32, -bound, bound)
    b_out = jax.random.uniform(k_b, (1, vocab_size), jnp.float32, -bound, bound)

    return {
        "emb_table": emb_table,
        "w_ih": w_ih,
        "w_hh": w_hh,
        "b_rnn": b_rnn,
        "w_out": w_out,
        "b_out": b_out,
    }


def lm_rnn_reference(ids, params):
    """Pure-JAX reference (weights rounded to bf16 to mirror the kernel path)."""
    emb = jnp.take(params["emb_table"], ids, axis=0)               # (B, T, E)
    w_ih = params["w_ih"].astype(jnp.bfloat16).astype(jnp.float32)
    w_hh = params["w_hh"].astype(jnp.bfloat16).astype(jnp.float32)
    w_out = params["w_out"].astype(jnp.bfloat16).astype(jnp.float32)
    b_rnn = params["b_rnn"][0]
    b_out = params["b_out"][0]
    B = ids.shape[0]
    H = w_hh.shape[0]

    def step(h, x_t):
        h_new = jnp.tanh(x_t @ w_ih + b_rnn + h @ w_hh)
        return h_new, h_new

    xs = jnp.transpose(emb, (1, 0, 2))                              # (T, B, E)
    _, hs = lax.scan(step, jnp.zeros((B, H), jnp.float32), xs)      # (T, B, H)
    logits = hs @ w_out + b_out                                     # (T, B, V)
    return jnp.transpose(logits, (1, 2, 0))                         # (B, V, T)


if __name__ == "__main__":
    # Small shapes consistent with the module; B=16 exercises the half-stream
    # recurrence path and a multi-chunk time grid.
    B, T = 16, 8
    EMB, HID, VOCAB = 32, 32, 64

    key = jax.random.PRNGKey(0)
    k_params, k_ids = jax.random.split(key)
    params = init_params(k_params, VOCAB, EMB, HID, pad_index=0)
    ids = jax.random.randint(k_ids, (B, T), 0, VOCAB, dtype=jnp.int32)

    out = jax.jit(lm_rnn_forward)(ids, params)
    out = jax.block_until_ready(out)
    assert out.shape == (B, VOCAB, T), out.shape
    assert bool(jnp.all(jnp.isfinite(out)))

    ref = jax.jit(lm_rnn_reference)(ids, params)
    ref = jax.block_until_ready(ref)
    max_err = float(jnp.max(jnp.abs(out - ref)))
    assert max_err < 7.5e-2, f"max abs error {max_err}"

    print("KERNEL_OK")
</pallas_src>

<mosaic_0001>
module attributes {stable_mosaic.version = 11 : i64} {
  func.func @rnn_kernel(%arg0: i32, %arg1: i32, %arg2: memref<8x16x128xbf16, #tpu.memory_space<vmem>>, %arg3: memref<128x128xbf16, #tpu.memory_space<vmem>>, %arg4: memref<8x16x128xbf16, #tpu.memory_space<vmem>>, %arg5: memref<16x128xf32, #tpu.memory_space<vmem>>) attributes {dimension_semantics = [#tpu.dimension_semantics<parallel>, #tpu.dimension_semantics<arbitrary>], iteration_bounds = array<i64: 1, 1>, scalar_prefetch = 0 : i64, scratch_operands = 1 : i64, tpu.core_type = #tpu.core_type<tc>, window_params = [{transform_indices = @transform_0, window_bounds = array<i64: 8, 16, 128>}, {pipeline_mode = #tpu.pipeline_mode<synchronous>, transform_indices = @transform_1, window_bounds = array<i64: 128, 128>}, {transform_indices = @transform_2, window_bounds = array<i64: 8, 16, 128>}]} {
    %c0_i32 = arith.constant 0 : i32
    %0 = arith.cmpi eq, %arg1, %c0_i32 : i32
    %1 = arith.extui %0 : i1 to i32
    %c0_i32_0 = arith.constant 0 : i32
    %2 = arith.cmpi ne, %1, %c0_i32_0 : i32
    scf.if %2 {
      %cst_57 = arith.constant 0.000000e+00 : f32
      %176 = vector.broadcast %cst_57 : f32 to vector<16x128xf32>
      %c0_58 = arith.constant 0 : index
      %c0_59 = arith.constant 0 : index
      %177 = vector.load %arg5[%c0_58, %c0_59] : memref<16x128xf32, #tpu.memory_space<vmem>>, vector<16x128xf32>
      tpu.vector_store %arg5[%c0_58, %c0_59], %176 {strides = array<i32>} : memref<16x128xf32, #tpu.memory_space<vmem>>, vector<16x128xf32>,
    } else {
    }
    %c0 = arith.constant 0 : index
    %c0_1 = arith.constant 0 : index
    %3 = vector.load %arg3[%c0, %c0_1] : memref<128x128xbf16, #tpu.memory_space<vmem>>, vector<128x128xbf16>
    %c0_2 = arith.constant 0 : index
    %c0_3 = arith.constant 0 : index
    %4 = vector.load %arg5[%c0_2, %c0_3] : memref<16x128xf32, #tpu.memory_space<vmem>>, vector<8x128xf32>
    %c8 = arith.constant 8 : index
    %c0_4 = arith.constant 0 : index
    %5 = vector.load %arg5[%c8, %c0_4] : memref<16x128xf32, #tpu.memory_space<vmem>>, vector<8x128xf32>
    %c0_i32_5 = arith.constant 0 : i32
    %6 = arith.index_cast %c0_i32_5 : i32 to index
    %c0_6 = arith.constant 0 : index
    %c0_7 = arith.constant 0 : index
    %7 = vector.load %arg2[%6, %c0_6, %c0_7] : memref<8x16x128xbf16, #tpu.memory_space<vmem>>, vector<1x16x128xbf16>
    %8 = vector.shape_cast %7 : vector<1x16x128xbf16> to vector<16x128xbf16>
    %9 = vector.extract_strided_slice %8 {offsets = [0, 0], sizes = [8, 128], strides = [1, 1]} : vector<16x128xbf16> to vector<8x128xbf16>
    %10 = arith.extf %9 : vector<8x128xbf16> to vector<8x128xf32>
    %11 = vector.extract_strided_slice %8 {offsets = [8, 0], sizes = [8, 128], strides = [1, 1]} : vector<16x128xbf16> to vector<8x128xbf16>
    %12 = arith.extf %11 : vector<8x128xbf16> to vector<8x128xf32>
    %13 = arith.truncf %4 : vector<8x128xf32> to vector<8x128xbf16>
    %cst = arith.constant dense<0.000000e+00> : vector<8x128xf32>
    %14 = tpu.matmul %13, %3, %cst {dimension_numbers = #tpu.dot_dimension_numbers<[1], [0], [0], [1], [0, 0, 1, 1], [], []>} : vector<8x128xbf16>, vector<128x128xbf16>, vector<8x128xf32> -> vector<8x128xf32>
    %15 = arith.addf %10, %14 : vector<8x128xf32>
    %16 = arith.truncf %5 : vector<8x128xf32> to vector<8x128xbf16>
    %cst_8 = arith.constant dense<0.000000e+00> : vector<8x128xf32>
    %17 = tpu.matmul %16, %3, %cst_8 {dimension_numbers = #tpu.dot_dimension_numbers<[1], [0], [0], [1], [0, 0, 1, 1], [], []>} : vector<8x128xbf16>, vector<128x128xbf16>, vector<8x128xf32> -> vector<8x128xf32>
    %18 = arith.addf %12, %17 : vector<8x128xf32>
    %19 = math.tanh %15 : vector<8x128xf32>
    %20 = math.tanh %18 : vector<8x128xf32>
    %21 = tpu.concatenate %19, %20 in 0 : vector<8x128xf32>, vector<8x128xf32> -> vector<16x128xf32>
    %22 = arith.truncf %21 : vector<16x128xf32> to vector<16x128xbf16>
    %23 = arith.index_cast %c0_i32_5 : i32 to index
    %c0_9 = arith.constant 0 : index
    %c0_10 = arith.constant 0 : index
    %24 = vector.load %arg4[%23, %c0_9, %c0_10] : memref<8x16x128xbf16, #tpu.memory_space<vmem>>, vector<1x16x128xbf16>
    %25 = vector.shape_cast %24 : vector<1x16x128xbf16> to vector<16x128xbf16>
    %26 = vector.shape_cast %22 : vector<16x128xbf16> to vector<1x16x128xbf16>
    tpu.vector_store %arg4[%23, %c0_9, %c0_10], %26 {strides = array<i32>} : memref<8x16x128xbf16, #tpu.memory_space<vmem>>, vector<1x16x128xbf16>,
    %c1_i32 = arith.constant 1 : i32
    %27 = arith.index_cast %c1_i32 : i32 to index
    %c0_11 = arith.constant 0 : index
    %c0_12 = arith.constant 0 : index
    %28 = vector.load %arg2[%27, %c0_11, %c0_12] : memref<8x16x128xbf16, #tpu.memory_space<vmem>>, vector<1x16x128xbf16>
    %29 = vector.shape_cast %28 : vector<1x16x128xbf16> to vector<16x128xbf16>
    %30 = vector.extract_strided_slice %29 {offsets = [0, 0], sizes = [8, 128], strides = [1, 1]} : vector<16x128xbf16> to vector<8x128xbf16>
    %31 = arith.extf %30 : vector<8x128xbf16> to vector<8x128xf32>
    %32 = vector.extract_strided_slice %29 {offsets = [8, 0], sizes = [8, 128], strides = [1, 1]} : vector<16x128xbf16> to vector<8x128xbf16>
    %33 = arith.extf %32 : vector<8x128xbf16> to vector<8x128xf32>
    %34 = arith.truncf %19 : vector<8x128xf32> to vector<8x128xbf16>
    %cst_13 = arith.constant dense<0.000000e+00> : vector<8x128xf32>
    %35 = tpu.matmul %34, %3, %cst_13 {dimension_numbers = #tpu.dot_dimension_numbers<[1], [0], [0], [1], [0, 0, 1, 1], [], []>} : vector<8x128xbf16>, vector<128x128xbf16>, vector<8x128xf32> -> vector<8x128xf32>
    %36 = arith.addf %31, %35 : vector<8x128xf32>
    %37 = arith.truncf %20 : vector<8x128xf32> to vector<8x128xbf16>
    %cst_14 = arith.constant dense<0.000000e+00> : vector<8x128xf32>
    %38 = tpu.matmul %37, %3, %cst_14 {dimension_numbers = #tpu.dot_dimension_numbers<[1], [0], [0], [1], [0, 0, 1, 1], [], []>} : vector<8x128xbf16>, vector<128x128xbf16>, vector<8x128xf32> -> vector<8x128xf32>
    %39 = arith.addf %33, %38 : vector<8x128xf32>
    %40 = math.tanh %36 : vector<8x128xf32>
    %41 = math.tanh %39 : vector<8x128xf32>
    %42 = tpu.concatenate %40, %41 in 0 : vector<8x128xf32>, vector<8x128xf32> -> vector<16x128xf32>
    %43 = arith.truncf %42 : vector<16x128xf32> to vector<16x128xbf16>
    %44 = arith.index_cast %c1_i32 : i32 to index
    %c0_15 = arith.constant 0 : index
    %c0_16 = arith.constant 0 : index
    %45 = vector.load %arg4[%44, %c0_15, %c0_16] : memref<8x16x128xbf16, #tpu.memory_space<vmem>>, vector<1x16x128xbf16>
    %46 = vector.shape_cast %45 : vector<1x16x128xbf16> to vector<16x128xbf16>
    %47 = vector.shape_cast %43 : vector<16x128xbf16> to vector<1x16x128xbf16>
    tpu.vector_store %arg4[%44, %c0_15, %c0_16], %47 {strides = array<i32>} : memref<8x16x128xbf16, #tpu.memory_space<vmem>>, vector<1x16x128xbf16>,
    %c2_i32 = arith.constant 2 : i32
    %48 = arith.index_cast %c2_i32 : i32 to index
    %c0_17 = arith.constant 0 : index
    %c0_18 = arith.constant 0 : index
    %49 = vector.load %arg2[%48, %c0_17, %c0_18] : memref<8x16x128xbf16, #tpu.memory_space<vmem>>, vector<1x16x128xbf16>
    %50 = vector.shape_cast %49 : vector<1x16x128xbf16> to vector<16x128xbf16>
    %51 = vector.extract_strided_slice %50 {offsets = [0, 0], sizes = [8, 128], strides = [1, 1]} : vector<16x128xbf16> to vector<8x128xbf16>
    %52 = arith.extf %51 : vector<8x128xbf16> to vector<8x128xf32>
    %53 = vector.extract_strided_slice %50 {offsets = [8, 0], sizes = [8, 128], strides = [1, 1]} : vector<16x128xbf16> to vector<8x128xbf16>
    %54 = arith.extf %53 : vector<8x128xbf16> to vector<8x128xf32>
    %55 = arith.truncf %40 : vector<8x128xf32> to vector<8x128xbf16>
    %cst_19 = arith.constant dense<0.000000e+00> : vector<8x128xf32>
    %56 = tpu.matmul %55, %3, %cst_19 {dimension_numbers = #tpu.dot_dimension_numbers<[1], [0], [0], [1], [0, 0, 1, 1], [], []>} : vector<8x128xbf16>, vector<128x128xbf16>, vector<8x128xf32> -> vector<8x128xf32>
    %57 = arith.addf %52, %56 : vector<8x128xf32>
    %58 = arith.truncf %41 : vector<8x128xf32> to vector<8x128xbf16>
    %cst_20 = arith.constant dense<0.000000e+00> : vector<8x128xf32>
    %59 = tpu.matmul %58, %3, %cst_20 {dimension_numbers = #tpu.dot_dimension_numbers<[1], [0], [0], [1], [0, 0, 1, 1], [], []>} : vector<8x128xbf16>, vector<128x128xbf16>, vector<8x128xf32> -> vector<8x128xf32>
    %60 = arith.addf %54, %59 : vector<8x128xf32>
    %61 = math.tanh %57 : vector<8x128xf32>
    %62 = math.tanh %60 : vector<8x128xf32>
    %63 = tpu.concatenate %61, %62 in 0 : vector<8x128xf32>, vector<8x128xf32> -> vector<16x128xf32>
    %64 = arith.truncf %63 : vector<16x128xf32> to vector<16x128xbf16>
    %65 = arith.index_cast %c2_i32 : i32 to index
    %c0_21 = arith.constant 0 : index
    %c0_22 = arith.constant 0 : index
    %66 = vector.load %arg4[%65, %c0_21, %c0_22] : memref<8x16x128xbf16, #tpu.memory_space<vmem>>, vector<1x16x128xbf16>
    %67 = vector.shape_cast %66 : vector<1x16x128xbf16> to vector<16x128xbf16>
    %68 = vector.shape_cast %64 : vector<16x128xbf16> to vector<1x16x128xbf16>
    tpu.vector_store %arg4[%65, %c0_21, %c0_22], %68 {strides = array<i32>} : memref<8x16x128xbf16, #tpu.memory_space<vmem>>, vector<1x16x128xbf16>,
    %c3_i32 = arith.constant 3 : i32
    %69 = arith.index_cast %c3_i32 : i32 to index
    %c0_23 = arith.constant 0 : index
    %c0_24 = arith.constant 0 : index
    %70 = vector.load %arg2[%69, %c0_23, %c0_24] : memref<8x16x128xbf16, #tpu.memory_space<vmem>>, vector<1x16x128xbf16>
    %71 = vector.shape_cast %70 : vector<1x16x128xbf16> to vector<16x128xbf16>
    %72 = vector.extract_strided_slice %71 {offsets = [0, 0], sizes = [8, 128], strides = [1, 1]} : vector<16x128xbf16> to vector<8x128xbf16>
    %73 = arith.extf %72 : vector<8x128xbf16> to vector<8x128xf32>
    %74 = vector.extract_strided_slice %71 {offsets = [8, 0], sizes = [8, 128], strides = [1, 1]} : vector<16x128xbf16> to vector<8x128xbf16>
    %75 = arith.extf %74 : vector<8x128xbf16> to vector<8x128xf32>
    %76 = arith.truncf %61 : vector<8x128xf32> to vector<8x128xbf16>
    %cst_25 = arith.constant dense<0.000000e+00> : vector<8x128xf32>
    %77 = tpu.matmul %76, %3, %cst_25 {dimension_numbers = #tpu.dot_dimension_numbers<[1], [0], [0], [1], [0, 0, 1, 1], [], []>} : vector<8x128xbf16>, vector<128x128xbf16>, vector<8x128xf32> -> vector<8x128xf32>
    %78 = arith.addf %73, %77 : vector<8x128xf32>
    %79 = arith.truncf %62 : vector<8x128xf32> to vector<8x128xbf16>
    %cst_26 = arith.constant dense<0.000000e+00> : vector<8x128xf32>
    %80 = tpu.matmul %79, %3, %cst_26 {dimension_numbers = #tpu.dot_dimension_numbers<[1], [0], [0], [1], [0, 0, 1, 1], [], []>} : vector<8x128xbf16>, vector<128x128xbf16>, vector<8x128xf32> -> vector<8x128xf32>
    %81 = arith.addf %75, %80 : vector<8x128xf32>
    %82 = math.tanh %78 : vector<8x128xf32>
    %83 = math.tanh %81 : vector<8x128xf32>
    %84 = tpu.concatenate %82, %83 in 0 : vector<8x128xf32>, vector<8x128xf32> -> vector<16x128xf32>
    %85 = arith.truncf %84 : vector<16x128xf32> to vector<16x128xbf16>
    %86 = arith.index_cast %c3_i32 : i32 to index
    %c0_27 = arith.constant 0 : index
    %c0_28 = arith.constant 0 : index
    %87 = vector.load %arg4[%86, %c0_27, %c0_28] : memref<8x16x128xbf16, #tpu.memory_space<vmem>>, vector<1x16x128xbf16>
    %88 = vector.shape_cast %87 : vector<1x16x128xbf16> to vector<16x128xbf16>
    %89 = vector.shape_cast %85 : vector<16x128xbf16> to vector<1x16x128xbf16>
    tpu.vector_store %arg4[%86, %c0_27, %c0_28], %89 {strides = array<i32>} : memref<8x16x128xbf16, #tpu.memory_space<vmem>>, vector<1x16x128xbf16>,
    %c4_i32 = arith.constant 4 : i32
    %90 = arith.index_cast %c4_i32 : i32 to index
    %c0_29 = arith.constant 0 : index
    %c0_30 = arith.constant 0 : index
    %91 = vector.load %arg2[%90, %c0_29, %c0_30] : memref<8x16x128xbf16, #tpu.memory_space<vmem>>, vector<1x16x128xbf16>
    %92 = vector.shape_cast %91 : vector<1x16x128xbf16> to vector<16x128xbf16>
    %93 = vector.extract_strided_slice %92 {offsets = [0, 0], sizes = [8, 128], strides = [1, 1]} : vector<16x128xbf16> to vector<8x128xbf16>
    %94 = arith.extf %93 : vector<8x128xbf16> to vector<8x128xf32>
    %95 = vector.extract_strided_slice %92 {offsets = [8, 0], sizes = [8, 128], strides = [1, 1]} : vector<16x128xbf16> to vector<8x128xbf16>
    %96 = arith.extf %95 : vector<8x128xbf16> to vector<8x128xf32>
    %97 = arith.truncf %82 : vector<8x128xf32> to vector<8x128xbf16>
    %cst_31 = arith.constant dense<0.000000e+00> : vector<8x128xf32>
    %98 = tpu.matmul %97, %3, %cst_31 {dimension_numbers = #tpu.dot_dimension_numbers<[1], [0], [0], [1], [0, 0, 1, 1], [], []>} : vector<8x128xbf16>, vector<128x128xbf16>, vector<8x128xf32> -> vector<8x128xf32>
    %99 = arith.addf %94, %98 : vector<8x128xf32>
    %100 = arith.truncf %83 : vector<8x128xf32> to vector<8x128xbf16>
    %cst_32 = arith.constant dense<0.000000e+00> : vector<8x128xf32>
    %101 = tpu.matmul %100, %3, %cst_32 {dimension_numbers = #tpu.dot_dimension_numbers<[1], [0], [0], [1], [0, 0, 1, 1], [], []>} : vector<8x128xbf16>, vector<128x128xbf16>, vector<8x128xf32> -> vector<8x128xf32>
    %102 = arith.addf %96, %101 : vector<8x128xf32>
    %103 = math.tanh %99 : vector<8x128xf32>
    %104 = math.tanh %102 : vector<8x128xf32>
    %105 = tpu.concatenate %103, %104 in 0 : vector<8x128xf32>, vector<8x128xf32> -> vector<16x128xf32>
    %106 = arith.truncf %105 : vector<16x128xf32> to vector<16x128xbf16>
    %107 = arith.index_cast %c4_i32 : i32 to index
    %c0_33 = arith.constant 0 : index
    %c0_34 = arith.constant 0 : index
    %108 = vector.load %arg4[%107, %c0_33, %c0_34] : memref<8x16x128xbf16, #tpu.memory_space<vmem>>, vector<1x16x128xbf16>
    %109 = vector.shape_cast %108 : vector<1x16x128xbf16> to vector<16x128xbf16>
    %110 = vector.shape_cast %106 : vector<16x128xbf16> to vector<1x16x128xbf16>
    tpu.vector_store %arg4[%107, %c0_33, %c0_34], %110 {strides = array<i32>} : memref<8x16x128xbf16, #tpu.memory_space<vmem>>, vector<1x16x128xbf16>,
    %c5_i32 = arith.constant 5 : i32
    %111 = arith.index_cast %c5_i32 : i32 to index
    %c0_35 = arith.constant 0 : index
    %c0_36 = arith.constant 0 : index
    %112 = vector.load %arg2[%111, %c0_35, %c0_36] : memref<8x16x128xbf16, #tpu.memory_space<vmem>>, vector<1x16x128xbf16>
    %113 = vector.shape_cast %112 : vector<1x16x128xbf16> to vector<16x128xbf16>
    %114 = vector.extract_strided_slice %113 {offsets = [0, 0], sizes = [8, 128], strides = [1, 1]} : vector<16x128xbf16> to vector<8x128xbf16>
    %115 = arith.extf %114 : vector<8x128xbf16> to vector<8x128xf32>
    %116 = vector.extract_strided_slice %113 {offsets = [8, 0], sizes = [8, 128], strides = [1, 1]} : vector<16x128xbf16> to vector<8x128xbf16>
    %117 = arith.extf %116 : vector<8x128xbf16> to vector<8x128xf32>
    %118 = arith.truncf %103 : vector<8x128xf32> to vector<8x128xbf16>
    %cst_37 = arith.constant dense<0.000000e+00> : vector<8x128xf32>
    %119 = tpu.matmul %118, %3, %cst_37 {dimension_numbers = #tpu.dot_dimension_numbers<[1], [0], [0], [1], [0, 0, 1, 1], [], []>} : vector<8x128xbf16>, vector<128x128xbf16>, vector<8x128xf32> -> vector<8x128xf32>
    %120 = arith.addf %115, %119 : vector<8x128xf32>
    %121 = arith.truncf %104 : vector<8x128xf32> to vector<8x128xbf16>
    %cst_38 = arith.constant dense<0.000000e+00> : vector<8x128xf32>
    %122 = tpu.matmul %121, %3, %cst_38 {dimension_numbers = #tpu.dot_dimension_numbers<[1], [0], [0], [1], [0, 0, 1, 1], [], []>} : vector<8x128xbf16>, vector<128x128xbf16>, vector<8x128xf32> -> vector<8x128xf32>
    %123 = arith.addf %117, %122 : vector<8x128xf32>
    %124 = math.tanh %120 : vector<8x128xf32>
    %125 = math.tanh %123 : vector<8x128xf32>
    %126 = tpu.concatenate %124, %125 in 0 : vector<8x128xf32>, vector<8x128xf32> -> vector<16x128xf32>
    %127 = arith.truncf %126 : vector<16x128xf32> to vector<16x128xbf16>
    %128 = arith.index_cast %c5_i32 : i32 to index
    %c0_39 = arith.constant 0 : index
    %c0_40 = arith.constant 0 : index
    %129 = vector.load %arg4[%128, %c0_39, %c0_40] : memref<8x16x128xbf16, #tpu.memory_space<vmem>>, vector<1x16x128xbf16>
    %130 = vector.shape_cast %129 : vector<1x16x128xbf16> to vector<16x128xbf16>
    %131 = vector.shape_cast %127 : vector<16x128xbf16> to vector<1x16x128xbf16>
    tpu.vector_store %arg4[%128, %c0_39, %c0_40], %131 {strides = array<i32>} : memref<8x16x128xbf16, #tpu.memory_space<vmem>>, vector<1x16x128xbf16>,
    %c6_i32 = arith.constant 6 : i32
    %132 = arith.index_cast %c6_i32 : i32 to index
    %c0_41 = arith.constant 0 : index
    %c0_42 = arith.constant 0 : index
    %133 = vector.load %arg2[%132, %c0_41, %c0_42] : memref<8x16x128xbf16, #tpu.memory_space<vmem>>, vector<1x16x128xbf16>
    %134 = vector.shape_cast %133 : vector<1x16x128xbf16> to vector<16x128xbf16>
    %135 = vector.extract_strided_slice %134 {offsets = [0, 0], sizes = [8, 128], strides = [1, 1]} : vector<16x128xbf16> to vector<8x128xbf16>
    %136 = arith.extf %135 : vector<8x128xbf16> to vector<8x128xf32>
    %137 = vector.extract_strided_slice %134 {offsets = [8, 0], sizes = [8, 128], strides = [1, 1]} : vector<16x128xbf16> to vector<8x128xbf16>
    %138 = arith.extf %137 : vector<8x128xbf16> to vector<8x128xf32>
    %139 = arith.truncf %124 : vector<8x128xf32> to vector<8x128xbf16>
    %cst_43 = arith.constant dense<0.000000e+00> : vector<8x128xf32>
    %140 = tpu.matmul %139, %3, %cst_43 {dimension_numbers = #tpu.dot_dimension_numbers<[1], [0], [0], [1], [0, 0, 1, 1], [], []>} : vector<8x128xbf16>, vector<128x128xbf16>, vector<8x128xf32> -> vector<8x128xf32>
    %141 = arith.addf %136, %140 : vector<8x128xf32>
    %142 = arith.truncf %125 : vector<8x128xf32> to vector<8x128xbf16>
    %cst_44 = arith.constant dense<0.000000e+00> : vector<8x128xf32>
    %143 = tpu.matmul %142, %3, %cst_44 {dimension_numbers = #tpu.dot_dimension_numbers<[1], [0], [0], [1], [0, 0, 1, 1], [], []>} : vector<8x128xbf16>, vector<128x128xbf16>, vector<8x128xf32> -> vector<8x128xf32>
    %144 = arith.addf %138, %143 : vector<8x128xf32>
    %145 = math.tanh %141 : vector<8x128xf32>
    %146 = math.tanh %144 : vector<8x128xf32>
    %147 = tpu.concatenate %145, %146 in 0 : vector<8x128xf32>, vector<8x128xf32> -> vector<16x128xf32>
    %148 = arith.truncf %147 : vector<16x128xf32> to vector<16x128xbf16>
    %149 = arith.index_cast %c6_i32 : i32 to index
    %c0_45 = arith.constant 0 : index
    %c0_46 = arith.constant 0 : index
    %150 = vector.load %arg4[%149, %c0_45, %c0_46] : memref<8x16x128xbf16, #tpu.memory_space<vmem>>, vector<1x16x128xbf16>
    %151 = vector.shape_cast %150 : vector<1x16x128xbf16> to vector<16x128xbf16>
    %152 = vector.shape_cast %148 : vector<16x128xbf16> to vector<1x16x128xbf16>
    tpu.vector_store %arg4[%149, %c0_45, %c0_46], %152 {strides = array<i32>} : memref<8x16x128xbf16, #tpu.memory_space<vmem>>, vector<1x16x128xbf16>,
    %c7_i32 = arith.constant 7 : i32
    %153 = arith.index_cast %c7_i32 : i32 to index
    %c0_47 = arith.constant 0 : index
    %c0_48 = arith.constant 0 : index
    %154 = vector.load %arg2[%153, %c0_47, %c0_48] : memref<8x16x128xbf16, #tpu.memory_space<vmem>>, vector<1x16x128xbf16>
    %155 = vector.shape_cast %154 : vector<1x16x128xbf16> to vector<16x128xbf16>
    %156 = vector.extract_strided_slice %155 {offsets = [0, 0], sizes = [8, 128], strides = [1, 1]} : vector<16x128xbf16> to vector<8x128xbf16>
    %157 = arith.extf %156 : vector<8x128xbf16> to vector<8x128xf32>
    %158 = vector.extract_strided_slice %155 {offsets = [8, 0], sizes = [8, 128], strides = [1, 1]} : vector<16x128xbf16> to vector<8x128xbf16>
    %159 = arith.extf %158 : vector<8x128xbf16> to vector<8x128xf32>
    %160 = arith.truncf %145 : vector<8x128xf32> to vector<8x128xbf16>
    %cst_49 = arith.constant dense<0.000000e+00> : vector<8x128xf32>
    %161 = tpu.matmul %160, %3, %cst_49 {dimension_numbers = #tpu.dot_dimension_numbers<[1], [0], [0], [1], [0, 0, 1, 1], [], []>} : vector<8x128xbf16>, vector<128x128xbf16>, vector<8x128xf32> -> vector<8x128xf32>
    %162 = arith.addf %157, %161 : vector<8x128xf32>
    %163 = arith.truncf %146 : vector<8x128xf32> to vector<8x128xbf16>
    %cst_50 = arith.constant dense<0.000000e+00> : vector<8x128xf32>
    %164 = tpu.matmul %163, %3, %cst_50 {dimension_numbers = #tpu.dot_dimension_numbers<[1], [0], [0], [1], [0, 0, 1, 1], [], []>} : vector<8x128xbf16>, vector<128x128xbf16>, vector<8x128xf32> -> vector<8x128xf32>
    %165 = arith.addf %159, %164 : vector<8x128xf32>
    %166 = math.tanh %162 : vector<8x128xf32>
    %167 = math.tanh %165 : vector<8x128xf32>
    %168 = tpu.concatenate %166, %167 in 0 : vector<8x128xf32>, vector<8x128xf32> -> vector<16x128xf32>
    %169 = arith.truncf %168 : vector<16x128xf32> to vector<16x128xbf16>
    %170 = arith.index_cast %c7_i32 : i32 to index
    %c0_51 = arith.constant 0 : index
    %c0_52 = arith.constant 0 : index
    %171 = vector.load %arg4[%170, %c0_51, %c0_52] : memref<8x16x128xbf16, #tpu.memory_space<vmem>>, vector<1x16x128xbf16>
    %172 = vector.shape_cast %171 : vector<1x16x128xbf16> to vector<16x128xbf16>
    %173 = vector.shape_cast %169 : vector<16x128xbf16> to vector<1x16x128xbf16>
    tpu.vector_store %arg4[%170, %c0_51, %c0_52], %173 {strides = array<i32>} : memref<8x16x128xbf16, #tpu.memory_space<vmem>>, vector<1x16x128xbf16>,
    %c8_i32 = arith.constant 8 : i32
    %c0_53 = arith.constant 0 : index
    %c0_54 = arith.constant 0 : index
    %174 = vector.load %arg5[%c0_53, %c0_54] : memref<16x128xf32, #tpu.memory_space<vmem>>, vector<8x128xf32>
    tpu.vector_store %arg5[%c0_53, %c0_54], %166 {strides = array<i32>} : memref<16x128xf32, #tpu.memory_space<vmem>>, vector<8x128xf32>,
    %c8_55 = arith.constant 8 : index
    %c0_56 = arith.constant 0 : index
    %175 = vector.load %arg5[%c8_55, %c0_56] : memref<16x128xf32, #tpu.memory_space<vmem>>, vector<8x128xf32>
    tpu.vector_store %arg5[%c8_55, %c0_56], %167 {strides = array<i32>} : memref<16x128xf32, #tpu.memory_space<vmem>>, vector<8x128xf32>,
    return
  }
  func.func @transform_0(%arg0: i32, %arg1: i32) -> (i32, i32, i32) {
    %c0_i32 = arith.constant 0 : i32
    %c0_i32_0 = arith.constant 0 : i32
    return %arg1, %arg0, %c0_i32 : i32, i32, i32
  }
  func.func @transform_1(%arg0: i32, %arg1: i32) -> (i32, i32) {
    %c0_i32 = arith.constant 0 : i32
    %c0_i32_0 = arith.constant 0 : i32
    %c0_i32_1 = arith.constant 0 : i32
    return %c0_i32, %c0_i32_0 : i32, i32
  }
  func.func @transform_2(%arg0: i32, %arg1: i32) -> (i32, i32, i32) {
    %c0_i32 = arith.constant 0 : i32
    %c0_i32_0 = arith.constant 0 : i32
    return %arg1, %arg0, %c0_i32 : i32, i32, i32
  }
}

module attributes {stable_mosaic.version = 11 : i64} {
  func.func @linear_kernel(%arg0: i32, %arg1: i32, %arg2: memref<128x32xbf16, #tpu.memory_space<vmem>>, %arg3: memref<32x128xbf16, #tpu.memory_space<vmem>>, %arg4: memref<1x128xf32, #tpu.memory_space<vmem>>, %arg5: memref<128x128xbf16, #tpu.memory_space<vmem>>) attributes {dimension_semantics = [#tpu.dimension_semantics<parallel>, #tpu.dimension_semantics<parallel>], iteration_bounds = array<i64: 1, 1>, scalar_prefetch = 0 : i64, scratch_operands = 0 : i64, tpu.core_type = #tpu.core_type<tc>, window_params = [{transform_indices = @transform_0, window_bounds = array<i64: 128, 32>}, {transform_indices = @transform_1, window_bounds = array<i64: 32, 128>}, {transform_indices = @transform_2, window_bounds = array<i64: 1, 128>}, {transform_indices = @transform_3, window_bounds = array<i64: 128, 128>}]} {
    %c0 = arith.constant 0 : index
    %c0_0 = arith.constant 0 : index
    %0 = vector.load %arg2[%c0, %c0_0] : memref<128x32xbf16, #tpu.memory_space<vmem>>, vector<128x32xbf16>
    %c0_1 = arith.constant 0 : index
    %c0_2 = arith.constant 0 : index
    %1 = vector.load %arg3[%c0_1, %c0_2] : memref<32x128xbf16, #tpu.memory_space<vmem>>, vector<32x128xbf16>
    %cst = arith.constant dense<0.000000e+00> : vector<128x128xf32>
    %2 = tpu.matmul %0, %1, %cst {dimension_numbers = #tpu.dot_dimension_numbers<[1], [0], [0], [1], [0, 0, 1, 1], [], []>} : vector<128x32xbf16>, vector<32x128xbf16>, vector<128x128xf32> -> vector<128x128xf32>
    %c0_3 = arith.constant 0 : index
    %c0_4 = arith.constant 0 : index
    %3 = vector.load %arg4[%c0_3, %c0_4] : memref<1x128xf32, #tpu.memory_space<vmem>>, vector<1x128xf32>
    %4 = vector.broadcast %3 : vector<1x128xf32> to vector<128x128xf32>
    %5 = arith.addf %2, %4 : vector<128x128xf32>
    %6 = arith.truncf %5 : vector<128x128xf32> to vector<128x128xbf16>
    %c0_5 = arith.constant 0 : index
    %c0_6 = arith.constant 0 : index
    %7 = vector.load %arg5[%c0_5, %c0_6] : memref<128x128xbf16, #tpu.memory_space<vmem>>, vector<128x128xbf16>
    tpu.vector_store %arg5[%c0_5, %c0_6], %6 {strides = array<i32>} : memref<128x128xbf16, #tpu.memory_space<vmem>>, vector<128x128xbf16>,
    return
  }
  func.func @transform_0(%arg0: i32, %arg1: i32) -> (i32, i32) {
    %c0_i32 = arith.constant 0 : i32
    %c0_i32_0 = arith.constant 0 : i32
    return %arg0, %c0_i32 : i32, i32
  }
  func.func @transform_1(%arg0: i32, %arg1: i32) -> (i32, i32) {
    %c0_i32 = arith.constant 0 : i32
    %c0_i32_0 = arith.constant 0 : i32
    return %c0_i32, %arg1 : i32, i32
  }
  func.func @transform_2(%arg0: i32, %arg1: i32) -> (i32, i32) {
    %c0_i32 = arith.constant 0 : i32
    %c0_i32_0 = arith.constant 0 : i32
    return %c0_i32, %arg1 : i32, i32
  }
  func.func @transform_3(%arg0: i32, %arg1: i32) -> (i32, i32) {
    %c0_i32 = arith.constant 0 : i32
    return %arg0, %arg1 : i32, i32
  }
}

module attributes {stable_mosaic.version = 11 : i64} {
  func.func @linear_kernel(%arg0: i32, %arg1: i32, %arg2: memref<128x128xbf16, #tpu.memory_space<vmem>>, %arg3: memref<128x128xbf16, #tpu.memory_space<vmem>>, %arg4: memref<1x128xf32, #tpu.memory_space<vmem>>, %arg5: memref<128x128xf32, #tpu.memory_space<vmem>>) attributes {dimension_semantics = [#tpu.dimension_semantics<parallel>, #tpu.dimension_semantics<parallel>], iteration_bounds = array<i64: 1, 1>, scalar_prefetch = 0 : i64, scratch_operands = 0 : i64, tpu.core_type = #tpu.core_type<tc>, window_params = [{transform_indices = @transform_0, window_bounds = array<i64: 128, 128>}, {transform_indices = @transform_1, window_bounds = array<i64: 128, 128>}, {transform_indices = @transform_2, window_bounds = array<i64: 1, 128>}, {transform_indices = @transform_3, window_bounds = array<i64: 128, 128>}]} {
    %c0 = arith.constant 0 : index
    %c0_0 = arith.constant 0 : index
    %0 = vector.load %arg2[%c0, %c0_0] : memref<128x128xbf16, #tpu.memory_space<vmem>>, vector<128x128xbf16>
    %c0_1 = arith.constant 0 : index
    %c0_2 = arith.constant 0 : index
    %1 = vector.load %arg3[%c0_1, %c0_2] : memref<128x128xbf16, #tpu.memory_space<vmem>>, vector<128x128xbf16>
    %cst = arith.constant dense<0.000000e+00> : vector<128x128xf32>
    %2 = tpu.matmul %0, %1, %cst {dimension_numbers = #tpu.dot_dimension_numbers<[1], [0], [0], [1], [0, 0, 1, 1], [], []>} : vector<128x128xbf16>, vector<128x128xbf16>, vector<128x128xf32> -> vector<128x128xf32>
    %c0_3 = arith.constant 0 : index
    %c0_4 = arith.constant 0 : index
    %3 = vector.load %arg4[%c0_3, %c0_4] : memref<1x128xf32, #tpu.memory_space<vmem>>, vector<1x128xf32>
    %4 = vector.broadcast %3 : vector<1x128xf32> to vector<128x128xf32>
    %5 = arith.addf %2, %4 : vector<128x128xf32>
    %c0_5 = arith.constant 0 : index
    %c0_6 = arith.constant 0 : index
    %6 = vector.load %arg5[%c0_5, %c0_6] : memref<128x128xf32, #tpu.memory_space<vmem>>, vector<128x128xf32>
    tpu.vector_store %arg5[%c0_5, %c0_6], %5 {strides = array<i32>} : memref<128x128xf32, #tpu.memory_space<vmem>>, vector<128x128xf32>,
    return
  }
  func.func @transform_0(%arg0: i32, %arg1: i32) -> (i32, i32) {
    %c0_i32 = arith.constant 0 : i32
    %c0_i32_0 = arith.constant 0 : i32
    return %arg0, %c0_i32 : i32, i32
  }
  func.func @transform_1(%arg0: i32, %arg1: i32) -> (i32, i32) {
    %c0_i32 = arith.constant 0 : i32
    %c0_i32_0 = arith.constant 0 : i32
    return %c0_i32, %arg1 : i32, i32
  }
  func.func @transform_2(%arg0: i32, %arg1: i32) -> (i32, i32) {
    %c0_i32 = arith.constant 0 : i32
    %c0_i32_0 = arith.constant 0 : i32
    return %c0_i32, %arg1 : i32, i32
  }
  func.func @transform_3(%arg0: i32, %arg1: i32) -> (i32, i32) {
    %c0_i32 = arith.constant 0 : i32
    return %arg0, %arg1 : i32, i32
  }
}

</mosaic_0001>

<bundles_post_ra>
// kernel: lm_rnn_forward.3
= control target key start
LH: loop header
LB: loop body
LE: loop exit
PB: predicated region body
PF: predicated region fallthrough
CT: control target
= control target key end

     0   :  { %vm94_vm0 = vcmask 261120   ;;  %s527_s1 = inlined_call_operand.vmem [shape: bf16[32,128], index: 1, kind: input, shape index: {}]   ;;  %s528_s0 = inlined_call_operand.vmem [shape: bf16[128,32], index: 0, kind: input, shape index: {}]   ;;  %s529_s2 = inlined_call_operand.vmem [shape: f32[1,128], index: 2, kind: input, shape index: {}]   ;;  %s530_s3 = inlined_call_operand.vmem [shape: bf16[128,128], index: 3, kind: output, shape index: {}]  }
   0x1   :  { %v432_v0 = vld [vmem:[%s527_s1 + $0x8] sm:$0xff]   ;;  %v433_v1 = vld [vmem:[%s527_s1] sm:$0xff]   ;;  %v438_v6 = vld [vmem:[%s528_s0 + $0x10] sm:$0xff]  }
   0x2   :  { %408 = vmatprep.subr.bf16.mxu0 %v432_v0  ;;  %428 = vmatprep.subr.bf16.mxu1 %v432_v0  ;;  %v434_v2 = vld [vmem:[%s528_s0] sm:$0xff]   ;;  %v436_v4 = vld [vmem:[%s528_s0 + $0x8] sm:$0xff]   ;;  %v439_v7 = vld [vmem:[%s528_s0 + $0x30] sm:$0xff]  }
   0x3   :  { %409 = vmatpush3.bf16.msra.mxu0 %v432_v0  ;;  %430 = vmatpush3.bf16.msra.mxu1 %v432_v0  ;;  %v435_v3 = vld [vmem:[%s528_s0 + $0x20] sm:$0xff]   ;;  %v437_v5 = vld [vmem:[%s528_s0 + $0x28] sm:$0xff]   ;;  %v440_v8 = vld [vmem:[%s528_s0 + $0x18] sm:$0xff]  }
   0x4   :  { %410 = vmatprep.subr.bf16.mxu0 %v433_v1  ;;  %429 = vmatprep.subr.bf16.mxu1 %v433_v1  ;;  %v441_v9 = vld [vmem:[%s528_s0 + $0x38] sm:$0xff]   ;;  %v300_v12 = vld [vmem:[%s529_s2] ss:$0 sm:$0xff] }
   0x5   :  { %412 = vmatprep.mubr.msk.bf16.mxu0 %vm94_vm0, %v434_v2  ;;  %420 = vmatprep.mubr.msk.bf16.mxu1 %vm94_vm0, %v435_v3 }
   0x7   :  { %411 = vmatpush3.bf16.msra.mxu0 %v433_v1  ;;  %431 = vmatpush3.bf16.msra.mxu1 %v433_v1 }
   0xa   :  { %413 = vmatmul.mubr.msk.bf16.vlgmr.msra.gmra.mxu0 %vm94_vm0, %v436_v4  ;;  %421 = vmatmul.mubr.msk.bf16.vlgmr.msra.gmra.mxu1 %vm94_vm0, %v437_v5 }
   0xb   :  { %416 = vmatprep.mubr.msk.bf16.mxu0 %vm94_vm0, %v438_v6  ;;  %424 = vmatprep.mubr.msk.bf16.mxu1 %vm94_vm0, %v439_v7 }
  0x12   :  { %417 = vmatmul.mubr.msk.bf16.gmra.mxu0 %vm94_vm0, %v440_v8  ;;  %425 = vmatmul.mubr.msk.bf16.gmra.mxu1 %vm94_vm0, %v441_v9 }
  0xca   :  { %v414_v10 = vpop.f32.mrf.mxu0  ;;  %v422_v11 = vpop.f32.mrf.mxu1 }
  0xcb   :  { %v162_v17 = vadd.f32 %v414_v10, %v300_v12  ;;  %v194_v18 = vadd.f32 %v422_v11, %v300_v12 }
  0xcc   :  { %v153_v13 = vpop.f32.mrf.mxu0  ;;  %v185_v14 = vpop.f32.mrf.mxu1 }
  0xcd   :  { %v154_v21 = vadd.f32 %v300_v12, %v153_v13  ;;  %v186_v22 = vadd.f32 %v300_v12, %v185_v14 }
  0xce   :  { %v415_v15 = vpop.f32.mrf.mxu0  ;;  %v423_v16 = vpop.f32.mrf.mxu1 }
  0xcf   :  { %v165_v19 = vadd.f32 %v415_v15, %v300_v12  ;;  %v197_v20 = vadd.f32 %v423_v16, %v300_v12 }
  0xd0   :  { %v156_v23 = vpop.f32.mrf.mxu0  ;;  %v188_v24 = vpop.f32.mrf.mxu1 }
  0xd1   :  { %v359_v25 = vpack.c.bf16 %v165_v19, %v162_v17  ;;  %v379_v26 = vpack.c.bf16 %v197_v20, %v194_v18  ;;  %v157_v27 = vadd.f32 %v300_v12, %v156_v23  ;;  %v189_v28 = vadd.f32 %v300_v12, %v188_v24 }
  0xd2   :  { %v418_v29 = vpop.f32.mrf.mxu0  ;;  %v426_v30 = vpop.f32.mrf.mxu1 }
  0xd3   :  { %391 = vst [vmem:[%s530_s3 + $0x8] sm:$0xff] %v359_v25   ;;  %395 = vst [vmem:[%s530_s3 + $0x28] sm:$0xff] %v379_v26   ;;  %v354_v31 = vpack.c.bf16 %v157_v27, %v154_v21  ;;  %v374_v32 = vpack.c.bf16 %v189_v28, %v186_v22  ;;  %v178_v37 = vadd.f32 %v418_v29, %v300_v12 }
  0xd4   :  { %v169_v33 = vpop.f32.mrf.mxu0  ;;  %v201_v34 = vpop.f32.mrf.mxu1  ;;  %v210_v38 = vadd.f32 %v426_v30, %v300_v12 }
  0xd5   :  { %355 = vst [vmem:[%s530_s3] sm:$0xff] %v354_v31   ;;  %394 = vst [vmem:[%s530_s3 + $0x20] sm:$0xff] %v374_v32   ;;  %v170_v41 = vadd.f32 %v300_v12, %v169_v33  ;;  %v202_v42 = vadd.f32 %v300_v12, %v201_v34 }
  0xd6   :  { %v419_v35 = vpop.f32.mrf.mxu0  ;;  %v427_v36 = vpop.f32.mrf.mxu1 }
  0xd7   :  { %v181_v39 = vadd.f32 %v419_v35, %v300_v12  ;;  %v213_v40 = vadd.f32 %v427_v36, %v300_v12 }
  0xd8   :  { %v172_v43 = vpop.f32.mrf.mxu0  ;;  %v204_v44 = vpop.f32.mrf.mxu1 }
  0xd9   :  { %v369_v45 = vpack.c.bf16 %v181_v39, %v178_v37  ;;  %v389_v46 = vpack.c.bf16 %v213_v40, %v210_v38  ;;  %v173_v47 = vadd.f32 %v300_v12, %v172_v43  ;;  %v205_v48 = vadd.f32 %v300_v12, %v204_v44 }
  0xdb   :  { %393 = vst [vmem:[%s530_s3 + $0x18] sm:$0xff] %v369_v45   ;;  %397 = vst [vmem:[%s530_s3 + $0x38] sm:$0xff] %v389_v46   ;;  %v364_v49 = vpack.c.bf16 %v173_v47, %v170_v41  ;;  %v384_v50 = vpack.c.bf16 %v205_v48, %v202_v42 }
  0xdd   :  { %392 = vst [vmem:[%s530_s3 + $0x10] sm:$0xff] %v364_v49   ;;  %396 = vst [vmem:[%s530_s3 + $0x30] sm:$0xff] %v384_v50  }

// kernel: lm_rnn_forward.5
= control target key start
LH: loop header
LB: loop body
LE: loop exit
PB: predicated region body
PF: predicated region fallthrough
CT: control target
= control target key end

     0   :  { %s483_s1 = inlined_call_operand.vmem [shape: bf16[128,128], index: 1, kind: input, shape index: {}]   ;;  %s484_s0 = inlined_call_operand.vmem [shape: bf16[128,128], index: 0, kind: input, shape index: {}]   ;;  %s485_s2 = inlined_call_operand.vmem [shape: f32[1,128], index: 2, kind: input, shape index: {}]   ;;  %s486_s3 = inlined_call_operand.vmem [shape: f32[128,128], index: 3, kind: output, shape index: {}]  }
   0x1   :  { %v348_v0 = vld [vmem:[%s483_s1 + $0x38] sm:$0xff]   ;;  %v349_v1 = vld [vmem:[%s483_s1 + $0x30] sm:$0xff]   ;;  %v350_v2 = vld [vmem:[%s483_s1 + $0x28] sm:$0xff]  }
   0x2   :  { %300 = vmatprep.subr.bf16.mxu0 %v348_v0  ;;  %332 = vmatprep.subr.bf16.mxu1 %v348_v0  ;;  %v351_v3 = vld [vmem:[%s483_s1 + $0x20] sm:$0xff]   ;;  %v352_v6 = vld [vmem:[%s483_s1 + $0x18] sm:$0xff]   ;;  %v353_v7 = vld [vmem:[%s483_s1 + $0x10] sm:$0xff]  }
   0x3   :  { %301 = vmatpush3.bf16.msra.mxu0 %v348_v0  ;;  %340 = vmatpush3.bf16.msra.mxu1 %v348_v0  ;;  %v356_v4 = vld [vmem:[%s484_s0] sm:$0xff]   ;;  %v354_v8 = vld [vmem:[%s483_s1 + $0x8] sm:$0xff]   ;;  %v360_v12 = vld [vmem:[%s484_s0 + $0x10] sm:$0xff]  }
   0x4   :  { %302 = vmatprep.subr.bf16.mxu0 %v349_v1  ;;  %333 = vmatprep.subr.bf16.mxu1 %v349_v1  ;;  %v357_v5 = vld [vmem:[%s484_s0 + $0x20] sm:$0xff]   ;;  %v358_v10 = vld [vmem:[%s484_s0 + $0x8] sm:$0xff]   ;;  %v361_v13 = vld [vmem:[%s484_s0 + $0x30] sm:$0xff]  }
   0x5   :  { %316 = vmatprep.mubr.bf16.mxu0 %v356_v4  ;;  %324 = vmatprep.mubr.bf16.mxu1 %v357_v5  ;;  %v355_v9 = vld [vmem:[%s483_s1] sm:$0xff]   ;;  %v359_v11 = vld [vmem:[%s484_s0 + $0x28] sm:$0xff]   ;;  %v362_v14 = vld [vmem:[%s484_s0 + $0x18] sm:$0xff]  }
   0x6   :  { %v363_v15 = vld [vmem:[%s484_s0 + $0x38] sm:$0xff]   ;;  %v267_v16 = vld [vmem:[%s485_s2] ss:$0 sm:$0xff] }
   0x7   :  { %303 = vmatpush3.bf16.msra.mxu0 %v349_v1  ;;  %341 = vmatpush3.bf16.msra.mxu1 %v349_v1 }
   0x8   :  { %304 = vmatprep.subr.bf16.mxu0 %v350_v2  ;;  %334 = vmatprep.subr.bf16.mxu1 %v350_v2 }
   0xb   :  { %305 = vmatpush3.bf16.msra.mxu0 %v350_v2  ;;  %342 = vmatpush3.bf16.msra.mxu1 %v350_v2 }
   0xc   :  { %306 = vmatprep.subr.bf16.mxu0 %v351_v3  ;;  %335 = vmatprep.subr.bf16.mxu1 %v351_v3 }
   0xf   :  { %307 = vmatpush3.bf16.msra.mxu0 %v351_v3  ;;  %343 = vmatpush3.bf16.msra.mxu1 %v351_v3 }
  0x10   :  { %308 = vmatprep.subr.bf16.mxu0 %v352_v6  ;;  %336 = vmatprep.subr.bf16.mxu1 %v352_v6 }
  0x13   :  { %309 = vmatpush3.bf16.msra.mxu0 %v352_v6  ;;  %344 = vmatpush3.bf16.msra.mxu1 %v352_v6 }
  0x14   :  { %310 = vmatprep.subr.bf16.mxu0 %v353_v7  ;;  %337 = vmatprep.subr.bf16.mxu1 %v353_v7 }
  0x17   :  { %311 = vmatpush3.bf16.msra.mxu0 %v353_v7  ;;  %345 = vmatpush3.bf16.msra.mxu1 %v353_v7 }
  0x18   :  { %312 = vmatprep.subr.bf16.mxu0 %v354_v8  ;;  %338 = vmatprep.subr.bf16.mxu1 %v354_v8 }
  0x1b   :  { %313 = vmatpush3.bf16.msra.mxu0 %v354_v8  ;;  %346 = vmatpush3.bf16.msra.mxu1 %v354_v8 }
  0x1c   :  { %314 = vmatprep.subr.bf16.mxu0 %v355_v9  ;;  %339 = vmatprep.subr.bf16.mxu1 %v355_v9 }
  0x1f   :  { %315 = vmatpush3.bf16.msra.mxu0 %v355_v9  ;;  %347 = vmatpush3.bf16.msra.mxu1 %v355_v9 }
  0x22   :  { %317 = vmatmul.mubr.bf16.vlgmr.msra.gmra.mxu0 %v358_v10  ;;  %325 = vmatmul.mubr.bf16.vlgmr.msra.gmra.mxu1 %v359_v11 }
  0x23   :  { %320 = vmatprep.mubr.bf16.mxu0 %v360_v12  ;;  %328 = vmatprep.mubr.bf16.mxu1 %v361_v13 }
  0x2a   :  { %321 = vmatmul.mubr.bf16.gmra.mxu0 %v362_v14  ;;  %329 = vmatmul.mubr.bf16.gmra.mxu1 %v363_v15 }
  0xe2   :  { %v318_v17 = vpop.f32.mrf.mxu0  ;;  %v326_v18 = vpop.f32.mrf.mxu1 }
  0xe3   :  { %v193_v19 = vadd.f32 %v318_v17, %v267_v16  ;;  %v225_v20 = vadd.f32 %v326_v18, %v267_v16 }
  0xe4   :  { %v184_v21 = vpop.f32.mrf.mxu0  ;;  %v216_v22 = vpop.f32.mrf.mxu1 }
  0xe5   :  { %249 = vst [vmem:[%s486_s3 + $0x10] sm:$0xff] %v193_v19  ;;  %257 = vst [vmem:[%s486_s3 + $0x50] sm:$0xff] %v225_v20  ;;  %v185_v23 = vadd.f32 %v267_v16, %v184_v21  ;;  %v217_v24 = vadd.f32 %v267_v16, %v216_v22 }
  0xe6   :  { %v319_v25 = vpop.f32.mrf.mxu0  ;;  %v327_v26 = vpop.f32.mrf.mxu1 }
  0xe7   :  { %247 = vst [vmem:[%s486_s3] sm:$0xff] %v185_v23  ;;  %255 = vst [vmem:[%s486_s3 + $0x40] sm:$0xff] %v217_v24  ;;  %v196_v27 = vadd.f32 %v319_v25, %v267_v16  ;;  %v228_v28 = vadd.f32 %v327_v26, %v267_v16 }
  0xe8   :  { %v187_v29 = vpop.f32.mrf.mxu0  ;;  %v219_v30 = vpop.f32.mrf.mxu1 }
  0xe9   :  { %250 = vst [vmem:[%s486_s3 + $0x18] sm:$0xff] %v196_v27  ;;  %258 = vst [vmem:[%s486_s3 + $0x58] sm:$0xff] %v228_v28  ;;  %v188_v31 = vadd.f32 %v267_v16, %v187_v29  ;;  %v220_v32 = vadd.f32 %v267_v16, %v219_v30 }
  0xea   :  { %v322_v33 = vpop.f32.mrf.mxu0  ;;  %v330_v34 = vpop.f32.mrf.mxu1 }
  0xeb   :  { %248 = vst [vmem:[%s486_s3 + $0x8] sm:$0xff] %v188_v31  ;;  %256 = vst [vmem:[%s486_s3 + $0x48] sm:$0xff] %v220_v32  ;;  %v209_v35 = vadd.f32 %v322_v33, %v267_v16  ;;  %v241_v36 = vadd.f32 %v330_v34, %v267_v16 }
  0xec   :  { %v200_v37 = vpop.f32.mrf.mxu0  ;;  %v232_v38 = vpop.f32.mrf.mxu1 }
  0xed   :  { %253 = vst [vmem:[%s486_s3 + $0x30] sm:$0xff] %v209_v35  ;;  %261 = vst [vmem:[%s486_s3 + $0x70] sm:$0xff] %v241_v36  ;;  %v201_v39 = vadd.f32 %v267_v16, %v200_v37  ;;  %v233_v40 = vadd.f32 %v267_v16, %v232_v38 }
  0xee   :  { %v323_v41 = vpop.f32.mrf.mxu0  ;;  %v331_v42 = vpop.f32.mrf.mxu1 }
  0xef   :  { %251 = vst [vmem:[%s486_s3 + $0x20] sm:$0xff] %v201_v39  ;;  %259 = vst [vmem:[%s486_s3 + $0x60] sm:$0xff] %v233_v40  ;;  %v212_v43 = vadd.f32 %v323_v41, %v267_v16  ;;  %v244_v44 = vadd.f32 %v331_v42, %v267_v16 }
  0xf0   :  { %v203_v45 = vpop.f32.mrf.mxu0  ;;  %v235_v46 = vpop.f32.mrf.mxu1 }
  0xf1   :  { %254 = vst [vmem:[%s486_s3 + $0x38] sm:$0xff] %v212_v43  ;;  %262 = vst [vmem:[%s486_s3 + $0x78] sm:$0xff] %v244_v44  ;;  %v204_v47 = vadd.f32 %v267_v16, %v203_v45  ;;  %v236_v48 = vadd.f32 %v267_v16, %v235_v46 }
  0xf3   :  { %252 = vst [vmem:[%s486_s3 + $0x28] sm:$0xff] %v204_v47  ;;  %260 = vst [vmem:[%s486_s3 + $0x68] sm:$0xff] %v236_v48 }

// kernel: lm_rnn_forward.4
= control target key start
LH: loop header
LB: loop body
LE: loop exit
PB: predicated region body
PF: predicated region fallthrough
CT: control target
= control target key end

     0   :  { %v1565_v0 = vmov 0.0   ;;  %vm1566_vm0 = vmmov 0   ;;  %v1567_v9 = vmov 0.0|0.0   ;;  %s1959_s1 = inlined_call_operand.vmem [shape: bf16[128,128], index: 1, kind: input, shape index: {}]   ;;  %s1960_s0 = inlined_call_operand.vmem [shape: bf16[8,16,128], index: 0, kind: input, shape index: {}]   ;;  %s1961_s2 = inlined_call_operand.vmem [shape: bf16[8,16,128], index: 2, kind: output, shape index: {}]  }
   0x1   :  { %1202 = vmatprep.subr.bf16.mxu0 %v1565_v0  ;;  %1222 = vmatprep.subr.bf16.mxu1 %v1565_v0  ;;  %v1588_v1 = vld [vmem:[%s1959_s1 + $0x38] sm:$0xff]   ;;  %v1599_v2 = vld [vmem:[%s1959_s1 + $0x30] sm:$0xff]   ;;  %v1608_v3 = vld [vmem:[%s1959_s1 + $0x28] sm:$0xff]  }
   0x2   :  { %1218 = vmatprep.mubr.msk.bf16.mxu0 %vm1566_vm0, %v1565_v0  ;;  %1238 = vmatprep.mubr.msk.bf16.mxu1 %vm1566_vm0, %v1565_v0  ;;  %v1617_v4 = vld [vmem:[%s1959_s1 + $0x20] sm:$0xff]   ;;  %v1626_v5 = vld [vmem:[%s1959_s1 + $0x18] sm:$0xff]   ;;  %v1635_v6 = vld [vmem:[%s1959_s1 + $0x10] sm:$0xff]  }
   0x3   :  { %1203 = vmatpush3.bf16.msra.mxu0 %v1588_v1  ;;  %1223 = vmatpush3.bf16.msra.mxu1 %v1588_v1  ;;  %v1644_v7 = vld [vmem:[%s1959_s1 + $0x8] sm:$0xff]   ;;  %v1653_v8 = vld [vmem:[%s1959_s1] sm:$0xff]   ;;  %v1046_v46 = vld [vmem:[%s1960_s0 + $0x10] sm:$0xff]  }
   0x4   :  { %1204 = vmatprep.subr.bf16.mxu0 %v1565_v0  ;;  %1224 = vmatprep.subr.bf16.mxu1 %v1565_v0  ;;  %v973_v10 = vld [vmem:[%s1960_s0] sm:$0xff]   ;;  %v1044_v28 = vld [vmem:[%s1960_s0 + $0x8] sm:$0xff]   ;;  %v992_v47 = vunpack.c.l.bf16 %v1046_v46  ;;  %v993_v48 = vunpack.c.h.bf16 %v1046_v46 }
   0x5   :  { %v974_v11 = vunpack.c.l.bf16 %v973_v10  ;;  %v975_v12 = vunpack.c.h.bf16 %v973_v10  ;;  %v983_v29 = vunpack.c.l.bf16 %v1044_v28  ;;  %v984_v30 = vunpack.c.h.bf16 %v1044_v28 }
   0x7   :  { %1205 = vmatpush3.bf16.msra.mxu0 %v1599_v2  ;;  %1225 = vmatpush3.bf16.msra.mxu1 %v1599_v2 }
   0x8   :  { %1206 = vmatprep.subr.bf16.mxu0 %v1565_v0  ;;  %1226 = vmatprep.subr.bf16.mxu1 %v1565_v0 }
   0xb   :  { %1207 = vmatpush3.bf16.msra.mxu0 %v1608_v3  ;;  %1227 = vmatpush3.bf16.msra.mxu1 %v1608_v3 }
   0xc   :  { %1208 = vmatprep.subr.bf16.mxu0 %v1565_v0  ;;  %1228 = vmatprep.subr.bf16.mxu1 %v1565_v0 }
   0xf   :  { %1209 = vmatpush3.bf16.msra.mxu0 %v1617_v4  ;;  %1229 = vmatpush3.bf16.msra.mxu1 %v1617_v4 }
  0x10   :  { %1210 = vmatprep.subr.bf16.mxu0 %v1565_v0  ;;  %1230 = vmatprep.subr.bf16.mxu1 %v1565_v0 }
  0x13   :  { %1211 = vmatpush3.bf16.msra.mxu0 %v1626_v5  ;;  %1231 = vmatpush3.bf16.msra.mxu1 %v1626_v5 }
  0x14   :  { %1212 = vmatprep.subr.bf16.mxu0 %v1565_v0  ;;  %1232 = vmatprep.subr.bf16.mxu1 %v1565_v0 }
  0x17   :  { %1213 = vmatpush3.bf16.msra.mxu0 %v1635_v6  ;;  %1233 = vmatpush3.bf16.msra.mxu1 %v1635_v6 }
  0x18   :  { %1214 = vmatprep.subr.bf16.mxu0 %v1565_v0  ;;  %1234 = vmatprep.subr.bf16.mxu1 %v1565_v0 }
  0x1b   :  { %1215 = vmatpush3.bf16.msra.mxu0 %v1644_v7  ;;  %1235 = vmatpush3.bf16.msra.mxu1 %v1644_v7 }
  0x1c   :  { %1216 = vmatprep.subr.bf16.mxu0 %v1565_v0  ;;  %1236 = vmatprep.subr.bf16.mxu1 %v1565_v0 }
  0x1f   :  { %1217 = vmatpush3.bf16.msra.mxu0 %v1653_v8  ;;  %1237 = vmatpush3.bf16.msra.mxu1 %v1653_v8 }
  0x20   :  { %1242 = vmatprep.subr.bf16.mxu0 %v1565_v0  ;;  %1262 = vmatprep.subr.bf16.mxu1 %v1565_v0 }
  0x22   :  { %1219 = vmatmul.mubr.bf16.vlgmr.msra.gmra.mxu0 %v1567_v9  ;;  %1239 = vmatmul.mubr.bf16.vlgmr.msra.gmra.mxu1 %v1567_v9  ;;  %v1048_v9 = vld [vmem:[%s1960_s0 + $0x18] sm:$0xff]  }
  0x23   :  { %1243 = vmatpush3.bf16.msra.mxu0 %v1588_v1  ;;  %1263 = vmatpush3.bf16.msra.mxu1 %v1588_v1  ;;  %v1001_v10 = vunpack.c.l.bf16 %v1048_v9 }
  0x24   :  { %1244 = vmatprep.subr.bf16.mxu0 %v1565_v0  ;;  %1264 = vmatprep.subr.bf16.mxu1 %v1565_v0 }
  0x25   :  { %1258 = vmatprep.mubr.msk.bf16.mxu0 %vm1566_vm0, %v1565_v0  ;;  %1278 = vmatprep.mubr.msk.bf16.mxu1 %vm1566_vm0, %v1565_v0 }
  0x27   :  { %1245 = vmatpush3.bf16.msra.mxu0 %v1599_v2  ;;  %1265 = vmatpush3.bf16.msra.mxu1 %v1599_v2 }
  0x28   :  { %1246 = vmatprep.subr.bf16.mxu0 %v1565_v0  ;;  %1266 = vmatprep.subr.bf16.mxu1 %v1565_v0 }
  0x2b   :  { %1247 = vmatpush3.bf16.msra.mxu0 %v1608_v3  ;;  %1267 = vmatpush3.bf16.msra.mxu1 %v1608_v3 }
  0x2c   :  { %1248 = vmatprep.subr.bf16.mxu0 %v1565_v0  ;;  %1268 = vmatprep.subr.bf16.mxu1 %v1565_v0 }
  0x2f   :  { %1249 = vmatpush3.bf16.msra.mxu0 %v1617_v4  ;;  %1269 = vmatpush3.bf16.msra.mxu1 %v1617_v4 }
  0x30   :  { %1250 = vmatprep.subr.bf16.mxu0 %v1565_v0  ;;  %1270 = vmatprep.subr.bf16.mxu1 %v1565_v0 }
  0x33   :  { %1251 = vmatpush3.bf16.msra.mxu0 %v1626_v5  ;;  %1271 = vmatpush3.bf16.msra.mxu1 %v1626_v5 }
  0x34   :  { %1252 = vmatprep.subr.bf16.mxu0 %v1565_v0  ;;  %1272 = vmatprep.subr.bf16.mxu1 %v1565_v0 }
  0x37   :  { %1253 = vmatpush3.bf16.msra.mxu0 %v1635_v6  ;;  %1273 = vmatpush3.bf16.msra.mxu1 %v1635_v6 }
  0x38   :  { %1254 = vmatprep.subr.bf16.mxu0 %v1565_v0  ;;  %1274 = vmatprep.subr.bf16.mxu1 %v1565_v0 }
  0x3b   :  { %1255 = vmatpush3.bf16.msra.mxu0 %v1644_v7  ;;  %1275 = vmatpush3.bf16.msra.mxu1 %v1644_v7 }
  0x3c   :  { %1256 = vmatprep.subr.bf16.mxu0 %v1565_v0  ;;  %1276 = vmatprep.subr.bf16.mxu1 %v1565_v0 }
  0x3f   :  { %1257 = vmatpush3.bf16.msra.mxu0 %v1653_v8  ;;  %1277 = vmatpush3.bf16.msra.mxu1 %v1653_v8 }
  0x40   :  { %1282 = vmatprep.subr.bf16.mxu0 %v1565_v0  ;;  %1302 = vmatprep.subr.bf16.mxu1 %v1565_v0 }
  0xe2   :  { %v123_v13 = vpop.f32.mrf.mxu0  ;;  %v165_v14 = vpop.f32.mrf.mxu1 }
  0xe3   :  { %v129_v15 = vadd.f32 %v974_v11, %v123_v13  ;;  %v171_v16 = vadd.f32 %v975_v12, %v165_v14  ;;  %v1002_v11 = vunpack.c.h.bf16 %v1048_v9 }
  0xe4   :  { %v1220_v17 = vpop.f32.mrf.mxu0  ;;  %v1240_v18 = vpop.f32.mrf.mxu1 }
  0xe5   :  { %1533 = vtanh.f32 %v129_v15 }
  0xe6   :  { %1535 = vtanh.f32 %v171_v16  ;;  %v126_v19 = vpop.f32.mrf.mxu0  ;;  %v168_v20 = vpop.f32.mrf.mxu1 }
  0xe8   :  { %v1221_v21 = vpop.f32.mrf.mxu0  ;;  %v1241_v22 = vpop.f32.mrf.mxu1 }
  0xf2   :  { %v1534_v23 = vpop.eup %1533 }
  0xf3   :  { %v1536_v24 = vpop.eup %1535  ;;  %v189_v25 = vpack.c.bf16 %v1534_v23, %v1534_v23 }
  0xf4   :  { %v979_v26 = vpack.c.bf16 %v1536_v24, %v1534_v23  ;;  %v231_v27 = vpack.c.bf16 %v1536_v24, %v1536_v24 }
  0xf5   :  { %1259 = vmatmul.mubr.bf16.vlgmr.msra.gmra.mxu0 %v189_v25 }
  0xf6   :  { %980 = vst [vmem:[%s1961_s2] sm:$0xff] %v979_v26   ;;  %1279 = vmatmul.mubr.bf16.vlgmr.msra.gmra.mxu1 %v231_v27  ;;  %1283 = vmatpush3.bf16.msra.mxu0 %v1588_v1  ;;  %v1050_v27 = vld [vmem:[%s1960_s0 + $0x20] sm:$0xff]  }
  0xf7   :  { %1303 = vmatpush3.bf16.msra.mxu1 %v1588_v1  ;;  %1284 = vmatprep.subr.bf16.mxu0 %v1565_v0  ;;  %v1010_v28 = vunpack.c.l.bf16 %v1050_v27 }
  0xf8   :  { %1304 = vmatprep.subr.bf16.mxu1 %v1565_v0  ;;  %1298 = vmatprep.mubr.msk.bf16.mxu0 %vm1566_vm0, %v1565_v0 }
  0xf9   :  { %1318 = vmatprep.mubr.msk.bf16.mxu1 %vm1566_vm0, %v1565_v0 }
  0xfa   :  { %1285 = vmatpush3.bf16.msra.mxu0 %v1599_v2 }
  0xfb   :  { %1305 = vmatpush3.bf16.msra.mxu1 %v1599_v2  ;;  %1286 = vmatprep.subr.bf16.mxu0 %v1565_v0 }
  0xfc   :  { %1306 = vmatprep.subr.bf16.mxu1 %v1565_v0 }
  0xfe   :  { %1287 = vmatpush3.bf16.msra.mxu0 %v1608_v3 }
  0xff   :  { %1307 = vmatpush3.bf16.msra.mxu1 %v1608_v3  ;;  %1288 = vmatprep.subr.bf16.mxu0 %v1565_v0 }
 0x100   :  { %1308 = vmatprep.subr.bf16.mxu1 %v1565_v0 }
 0x102   :  { %1289 = vmatpush3.bf16.msra.mxu0 %v1617_v4 }
 0x103   :  { %1309 = vmatpush3.bf16.msra.mxu1 %v1617_v4  ;;  %1290 = vmatprep.subr.bf16.mxu0 %v1565_v0 }
 0x104   :  { %1310 = vmatprep.subr.bf16.mxu1 %v1565_v0 }
 0x106   :  { %1291 = vmatpush3.bf16.msra.mxu0 %v1626_v5 }
 0x107   :  { %1311 = vmatpush3.bf16.msra.mxu1 %v1626_v5  ;;  %1292 = vmatprep.subr.bf16.mxu0 %v1565_v0 }
 0x108   :  { %1312 = vmatprep.subr.bf16.mxu1 %v1565_v0 }
 0x10a   :  { %1293 = vmatpush3.bf16.msra.mxu0 %v1635_v6 }
 0x10b   :  { %1313 = vmatpush3.bf16.msra.mxu1 %v1635_v6  ;;  %1294 = vmatprep.subr.bf16.mxu0 %v1565_v0 }
 0x10c   :  { %1314 = vmatprep.subr.bf16.mxu1 %v1565_v0 }
 0x10e   :  { %1295 = vmatpush3.bf16.msra.mxu0 %v1644_v7 }
 0x10f   :  { %1315 = vmatpush3.bf16.msra.mxu1 %v1644_v7  ;;  %1296 = vmatprep.subr.bf16.mxu0 %v1565_v0 }
 0x110   :  { %1316 = vmatprep.subr.bf16.mxu1 %v1565_v0 }
 0x112   :  { %1297 = vmatpush3.bf16.msra.mxu0 %v1653_v8 }
 0x113   :  { %1317 = vmatpush3.bf16.msra.mxu1 %v1653_v8  ;;  %1322 = vmatprep.subr.bf16.mxu0 %v1565_v0 }
 0x114   :  { %1342 = vmatprep.subr.bf16.mxu1 %v1565_v0 }
 0x1b5   :  { %v224_v31 = vpop.f32.mrf.mxu0 }
 0x1b6   :  { %v230_v32 = vadd.f32 %v983_v29, %v224_v31  ;;  %v266_v33 = vpop.f32.mrf.mxu1  ;;  %v1011_v29 = vunpack.c.h.bf16 %v1050_v27 }
 0x1b7   :  { %v272_v34 = vadd.f32 %v984_v30, %v266_v33  ;;  %v1260_v35 = vpop.f32.mrf.mxu0 }
 0x1b8   :  { %1537 = vtanh.f32 %v230_v32  ;;  %v1280_v36 = vpop.f32.mrf.mxu1 }
 0x1b9   :  { %1539 = vtanh.f32 %v272_v34  ;;  %v227_v37 = vpop.f32.mrf.mxu0 }
 0x1ba   :  { %v269_v38 = vpop.f32.mrf.mxu1 }
 0x1bb   :  { %v1261_v39 = vpop.f32.mrf.mxu0 }
 0x1bc   :  { %v1281_v40 = vpop.f32.mrf.mxu1 }
 0x1c5   :  { %v1538_v41 = vpop.eup %1537 }
 0x1c6   :  { %v1540_v42 = vpop.eup %1539  ;;  %v291_v43 = vpack.c.bf16 %v1538_v41, %v1538_v41 }
 0x1c7   :  { %v988_v44 = vpack.c.bf16 %v1540_v42, %v1538_v41  ;;  %v333_v45 = vpack.c.bf16 %v1540_v42, %v1540_v42 }
 0x1c8   :  { %1299 = vmatmul.mubr.bf16.vlgmr.msra.gmra.mxu0 %v291_v43 }
 0x1c9   :  { %1045 = vst [vmem:[%s1961_s2 + $0x8] sm:$0xff] %v988_v44   ;;  %1319 = vmatmul.mubr.bf16.vlgmr.msra.gmra.mxu1 %v333_v45  ;;  %1323 = vmatpush3.bf16.msra.mxu0 %v1588_v1  ;;  %v1052_v45 = vld [vmem:[%s1960_s0 + $0x28] sm:$0xff]  }
 0x1ca   :  { %1343 = vmatpush3.bf16.msra.mxu1 %v1588_v1  ;;  %1324 = vmatprep.subr.bf16.mxu0 %v1565_v0  ;;  %v1019_v46 = vunpack.c.l.bf16 %v1052_v45 }
 0x1cb   :  { %1344 = vmatprep.subr.bf16.mxu1 %v1565_v0  ;;  %1338 = vmatprep.mubr.msk.bf16.mxu0 %vm1566_vm0, %v1565_v0 }
 0x1cc   :  { %1358 = vmatprep.mubr.msk.bf16.mxu1 %vm1566_vm0, %v1565_v0 }
 0x1cd   :  { %1325 = vmatpush3.bf16.msra.mxu0 %v1599_v2 }
 0x1ce   :  { %1345 = vmatpush3.bf16.msra.mxu1 %v1599_v2  ;;  %1326 = vmatprep.subr.bf16.mxu0 %v1565_v0 }
 0x1cf   :  { %1346 = vmatprep.subr.bf16.mxu1 %v1565_v0 }
 0x1d1   :  { %1327 = vmatpush3.bf16.msra.mxu0 %v1608_v3 }
 0x1d2   :  { %1347 = vmatpush3.bf16.msra.mxu1 %v1608_v3  ;;  %1328 = vmatprep.subr.bf16.mxu0 %v1565_v0 }
 0x1d3   :  { %1348 = vmatprep.subr.bf16.mxu1 %v1565_v0 }
 0x1d5   :  { %1329 = vmatpush3.bf16.msra.mxu0 %v1617_v4 }
 0x1d6   :  { %1349 = vmatpush3.bf16.msra.mxu1 %v1617_v4  ;;  %1330 = vmatprep.subr.bf16.mxu0 %v1565_v0 }
 0x1d7   :  { %1350 = vmatprep.subr.bf16.mxu1 %v1565_v0 }
 0x1d9   :  { %1331 = vmatpush3.bf16.msra.mxu0 %v1626_v5 }
 0x1da   :  { %1351 = vmatpush3.bf16.msra.mxu1 %v1626_v5  ;;  %1332 = vmatprep.subr.bf16.mxu0 %v1565_v0 }
 0x1db   :  { %1352 = vmatprep.subr.bf16.mxu1 %v1565_v0 }
 0x1dd   :  { %1333 = vmatpush3.bf16.msra.mxu0 %v1635_v6 }
 0x1de   :  { %1353 = vmatpush3.bf16.msra.mxu1 %v1635_v6  ;;  %1334 = vmatprep.subr.bf16.mxu0 %v1565_v0 }
 0x1df   :  { %1354 = vmatprep.subr.bf16.mxu1 %v1565_v0 }
 0x1e1   :  { %1335 = vmatpush3.bf16.msra.mxu0 %v1644_v7 }
 0x1e2   :  { %1355 = vmatpush3.bf16.msra.mxu1 %v1644_v7  ;;  %1336 = vmatprep.subr.bf16.mxu0 %v1565_v0 }
 0x1e3   :  { %1356 = vmatprep.subr.bf16.mxu1 %v1565_v0 }
 0x1e5   :  { %1337 = vmatpush3.bf16.msra.mxu0 %v1653_v8 }
 0x1e6   :  { %1357 = vmatpush3.bf16.msra.mxu1 %v1653_v8  ;;  %1362 = vmatprep.subr.bf16.mxu0 %v1565_v0 }
 0x1e7   :  { %1382 = vmatprep.subr.bf16.mxu1 %v1565_v0 }
 0x288   :  { %v326_v49 = vpop.f32.mrf.mxu0 }
 0x289   :  { %v332_v50 = vadd.f32 %v992_v47, %v326_v49  ;;  %v368_v51 = vpop.f32.mrf.mxu1  ;;  %v1020_v47 = vunpack.c.h.bf16 %v1052_v45 }
 0x28a   :  { %v374_v52 = vadd.f32 %v993_v48, %v368_v51  ;;  %v1300_v53 = vpop.f32.mrf.mxu0 }
 0x28b   :  { %1541 = vtanh.f32 %v332_v50  ;;  %v1320_v54 = vpop.f32.mrf.mxu1 }
 0x28c   :  { %1543 = vtanh.f32 %v374_v52  ;;  %v329_v55 = vpop.f32.mrf.mxu0 }
 0x28d   :  { %v371_v56 = vpop.f32.mrf.mxu1 }
 0x28e   :  { %v1301_v57 = vpop.f32.mrf.mxu0 }
 0x28f   :  { %v1321_v58 = vpop.f32.mrf.mxu1 }
 0x298   :  { %v1542_v59 = vpop.eup %1541 }
 0x299   :  { %v1544_v60 = vpop.eup %1543  ;;  %v393_v61 = vpack.c.bf16 %v1542_v59, %v1542_v59 }
 0x29a   :  { %v997_v62 = vpack.c.bf16 %v1544_v60, %v1542_v59  ;;  %v435_v63 = vpack.c.bf16 %v1544_v60, %v1544_v60 }
 0x29b   :  { %1339 = vmatmul.mubr.bf16.vlgmr.msra.gmra.mxu0 %v393_v61 }
 0x29c   :  { %1047 = vst [vmem:[%s1961_s2 + $0x10] sm:$0xff] %v997_v62   ;;  %1359 = vmatmul.mubr.bf16.vlgmr.msra.gmra.mxu1 %v435_v63  ;;  %1363 = vmatpush3.bf16.msra.mxu0 %v1588_v1 }
 0x29d   :  { %1383 = vmatpush3.bf16.msra.mxu1 %v1588_v1  ;;  %1364 = vmatprep.subr.bf16.mxu0 %v1565_v0 }
 0x29e   :  { %1384 = vmatprep.subr.bf16.mxu1 %v1565_v0  ;;  %1378 = vmatprep.mubr.msk.bf16.mxu0 %vm1566_vm0, %v1565_v0 }
 0x29f   :  { %1398 = vmatprep.mubr.msk.bf16.mxu1 %vm1566_vm0, %v1565_v0 }
 0x2a0   :  { %1365 = vmatpush3.bf16.msra.mxu0 %v1599_v2 }
 0x2a1   :  { %1385 = vmatpush3.bf16.msra.mxu1 %v1599_v2  ;;  %1366 = vmatprep.subr.bf16.mxu0 %v1565_v0 }
 0x2a2   :  { %1386 = vmatprep.subr.bf16.mxu1 %v1565_v0 }
 0x2a4   :  { %1367 = vmatpush3.bf16.msra.mxu0 %v1608_v3 }
 0x2a5   :  { %1387 = vmatpush3.bf16.msra.mxu1 %v1608_v3  ;;  %1368 = vmatprep.subr.bf16.mxu0 %v1565_v0 }
 0x2a6   :  { %1388 = vmatprep.subr.bf16.mxu1 %v1565_v0 }
 0x2a8   :  { %1369 = vmatpush3.bf16.msra.mxu0 %v1617_v4 }
 0x2a9   :  { %1389 = vmatpush3.bf16.msra.mxu1 %v1617_v4  ;;  %1370 = vmatprep.subr.bf16.mxu0 %v1565_v0 }
 0x2aa   :  { %1390 = vmatprep.subr.bf16.mxu1 %v1565_v0 }
 0x2ac   :  { %1371 = vmatpush3.bf16.msra.mxu0 %v1626_v5 }
 0x2ad   :  { %1391 = vmatpush3.bf16.msra.mxu1 %v1626_v5  ;;  %1372 = vmatprep.subr.bf16.mxu0 %v1565_v0 }
 0x2ae   :  { %1392 = vmatprep.subr.bf16.mxu1 %v1565_v0 }
 0x2b0   :  { %1373 = vmatpush3.bf16.msra.mxu0 %v1635_v6 }
 0x2b1   :  { %1393 = vmatpush3.bf16.msra.mxu1 %v1635_v6  ;;  %1374 = vmatprep.subr.bf16.mxu0 %v1565_v0 }
 0x2b2   :  { %1394 = vmatprep.subr.bf16.mxu1 %v1565_v0 }
 0x2b4   :  { %1375 = vmatpush3.bf16.msra.mxu0 %v1644_v7 }
 0x2b5   :  { %1395 = vmatpush3.bf16.msra.mxu1 %v1644_v7  ;;  %1376 = vmatprep.subr.bf16.mxu0 %v1565_v0 }
 0x2b6   :  { %1396 = vmatprep.subr.bf16.mxu1 %v1565_v0 }
 0x2b8   :  { %1377 = vmatpush3.bf16.msra.mxu0 %v1653_v8 }
 0x2b9   :  { %1397 = vmatpush3.bf16.msra.mxu1 %v1653_v8  ;;  %1402 = vmatprep.subr.bf16.mxu0 %v1565_v0 }
 0x2ba   :  { %1422 = vmatprep.subr.bf16.mxu1 %v1565_v0 }
 0x35b   :  { %v428_v12 = vpop.f32.mrf.mxu0 }
 0x35c   :  { %v434_v13 = vadd.f32 %v1001_v10, %v428_v12  ;;  %v470_v14 = vpop.f32.mrf.mxu1 }
 0x35d   :  { %v476_v15 = vadd.f32 %v1002_v11, %v470_v14  ;;  %v1340_v16 = vpop.f32.mrf.mxu0 }
 0x35e   :  { %1545 = vtanh.f32 %v434_v13  ;;  %v1360_v17 = vpop.f32.mrf.mxu1 }
 0x35f   :  { %1547 = vtanh.f32 %v476_v15  ;;  %v431_v18 = vpop.f32.mrf.mxu0  ;;  %v1056_v17 = vld [vmem:[%s1960_s0 + $0x38] sm:$0xff]  }
 0x360   :  { %v473_v19 = vpop.f32.mrf.mxu1  ;;  %v1037_v18 = vunpack.c.l.bf16 %v1056_v17 }
 0x361   :  { %v1341_v20 = vpop.f32.mrf.mxu0  ;;  %v1038_v19 = vunpack.c.h.bf16 %v1056_v17 }
 0x362   :  { %v1361_v21 = vpop.f32.mrf.mxu1 }
 0x36b   :  { %v1546_v22 = vpop.eup %1545 }
 0x36c   :  { %v1548_v23 = vpop.eup %1547  ;;  %v495_v24 = vpack.c.bf16 %v1546_v22, %v1546_v22 }
 0x36d   :  { %v1006_v25 = vpack.c.bf16 %v1548_v23, %v1546_v22  ;;  %v537_v26 = vpack.c.bf16 %v1548_v23, %v1548_v23 }
 0x36e   :  { %1379 = vmatmul.mubr.bf16.vlgmr.msra.gmra.mxu0 %v495_v24 }
 0x36f   :  { %1049 = vst [vmem:[%s1961_s2 + $0x18] sm:$0xff] %v1006_v25   ;;  %1399 = vmatmul.mubr.bf16.vlgmr.msra.gmra.mxu1 %v537_v26  ;;  %1403 = vmatpush3.bf16.msra.mxu0 %v1588_v1 }
 0x370   :  { %1423 = vmatpush3.bf16.msra.mxu1 %v1588_v1  ;;  %1404 = vmatprep.subr.bf16.mxu0 %v1565_v0 }
 0x371   :  { %1424 = vmatprep.subr.bf16.mxu1 %v1565_v0  ;;  %1418 = vmatprep.mubr.msk.bf16.mxu0 %vm1566_vm0, %v1565_v0 }
 0x372   :  { %1438 = vmatprep.mubr.msk.bf16.mxu1 %vm1566_vm0, %v1565_v0 }
 0x373   :  { %1405 = vmatpush3.bf16.msra.mxu0 %v1599_v2 }
 0x374   :  { %1425 = vmatpush3.bf16.msra.mxu1 %v1599_v2  ;;  %1406 = vmatprep.subr.bf16.mxu0 %v1565_v0 }
 0x375   :  { %1426 = vmatprep.subr.bf16.mxu1 %v1565_v0 }
 0x377   :  { %1407 = vmatpush3.bf16.msra.mxu0 %v1608_v3 }
 0x378   :  { %1427 = vmatpush3.bf16.msra.mxu1 %v1608_v3  ;;  %1408 = vmatprep.subr.bf16.mxu0 %v1565_v0 }
 0x379   :  { %1428 = vmatprep.subr.bf16.mxu1 %v1565_v0 }
 0x37b   :  { %1409 = vmatpush3.bf16.msra.mxu0 %v1617_v4 }
 0x37c   :  { %1429 = vmatpush3.bf16.msra.mxu1 %v1617_v4  ;;  %1410 = vmatprep.subr.bf16.mxu0 %v1565_v0 }
 0x37d   :  { %1430 = vmatprep.subr.bf16.mxu1 %v1565_v0 }
 0x37f   :  { %1411 = vmatpush3.bf16.msra.mxu0 %v1626_v5 }
 0x380   :  { %1431 = vmatpush3.bf16.msra.mxu1 %v1626_v5  ;;  %1412 = vmatprep.subr.bf16.mxu0 %v1565_v0 }
 0x381   :  { %1432 = vmatprep.subr.bf16.mxu1 %v1565_v0 }
 0x383   :  { %1413 = vmatpush3.bf16.msra.mxu0 %v1635_v6 }
 0x384   :  { %1433 = vmatpush3.bf16.msra.mxu1 %v1635_v6  ;;  %1414 = vmatprep.subr.bf16.mxu0 %v1565_v0 }
 0x385   :  { %1434 = vmatprep.subr.bf16.mxu1 %v1565_v0 }
 0x387   :  { %1415 = vmatpush3.bf16.msra.mxu0 %v1644_v7 }
 0x388   :  { %1435 = vmatpush3.bf16.msra.mxu1 %v1644_v7  ;;  %1416 = vmatprep.subr.bf16.mxu0 %v1565_v0 }
 0x389   :  { %1436 = vmatprep.subr.bf16.mxu1 %v1565_v0 }
 0x38b   :  { %1417 = vmatpush3.bf16.msra.mxu0 %v1653_v8 }
 0x38c   :  { %1437 = vmatpush3.bf16.msra.mxu1 %v1653_v8  ;;  %1442 = vmatprep.subr.bf16.mxu0 %v1565_v0 }
 0x38d   :  { %1462 = vmatprep.subr.bf16.mxu1 %v1565_v0 }
 0x42e   :  { %v530_v30 = vpop.f32.mrf.mxu0 }
 0x42f   :  { %v536_v31 = vadd.f32 %v1010_v28, %v530_v30  ;;  %v572_v32 = vpop.f32.mrf.mxu1 }
 0x430   :  { %v578_v33 = vadd.f32 %v1011_v29, %v572_v32  ;;  %v1380_v34 = vpop.f32.mrf.mxu0 }
 0x431   :  { %1549 = vtanh.f32 %v536_v31  ;;  %v1400_v35 = vpop.f32.mrf.mxu1 }
 0x432   :  { %1551 = vtanh.f32 %v578_v33  ;;  %v533_v36 = vpop.f32.mrf.mxu0 }
 0x433   :  { %v575_v37 = vpop.f32.mrf.mxu1 }
 0x434   :  { %v1381_v38 = vpop.f32.mrf.mxu0 }
 0x435   :  { %v1401_v39 = vpop.f32.mrf.mxu1 }
 0x43e   :  { %v1550_v40 = vpop.eup %1549 }
 0x43f   :  { %v1552_v41 = vpop.eup %1551  ;;  %v597_v42 = vpack.c.bf16 %v1550_v40, %v1550_v40 }
 0x440   :  { %v1015_v43 = vpack.c.bf16 %v1552_v41, %v1550_v40  ;;  %v639_v44 = vpack.c.bf16 %v1552_v41, %v1552_v41 }
 0x441   :  { %1419 = vmatmul.mubr.bf16.vlgmr.msra.gmra.mxu0 %v597_v42 }
 0x442   :  { %1051 = vst [vmem:[%s1961_s2 + $0x20] sm:$0xff] %v1015_v43   ;;  %1439 = vmatmul.mubr.bf16.vlgmr.msra.gmra.mxu1 %v639_v44  ;;  %1443 = vmatpush3.bf16.msra.mxu0 %v1588_v1 }
 0x443   :  { %1463 = vmatpush3.bf16.msra.mxu1 %v1588_v1  ;;  %1444 = vmatprep.subr.bf16.mxu0 %v1565_v0 }
 0x444   :  { %1464 = vmatprep.subr.bf16.mxu1 %v1565_v0  ;;  %1458 = vmatprep.mubr.msk.bf16.mxu0 %vm1566_vm0, %v1565_v0 }
 0x445   :  { %1478 = vmatprep.mubr.msk.bf16.mxu1 %vm1566_vm0, %v1565_v0 }
 0x446   :  { %1445 = vmatpush3.bf16.msra.mxu0 %v1599_v2 }
 0x447   :  { %1465 = vmatpush3.bf16.msra.mxu1 %v1599_v2  ;;  %1446 = vmatprep.subr.bf16.mxu0 %v1565_v0 }
 0x448   :  { %1466 = vmatprep.subr.bf16.mxu1 %v1565_v0 }
 0x44a   :  { %1447 = vmatpush3.bf16.msra.mxu0 %v1608_v3 }
 0x44b   :  { %1467 = vmatpush3.bf16.msra.mxu1 %v1608_v3  ;;  %1448 = vmatprep.subr.bf16.mxu0 %v1565_v0 }
 0x44c   :  { %1468 = vmatprep.subr.bf16.mxu1 %v1565_v0 }
 0x44e   :  { %1449 = vmatpush3.bf16.msra.mxu0 %v1617_v4 }
 0x44f   :  { %1469 = vmatpush3.bf16.msra.mxu1 %v1617_v4  ;;  %1450 = vmatprep.subr.bf16.mxu0 %v1565_v0 }
 0x450   :  { %1470 = vmatprep.subr.bf16.mxu1 %v1565_v0 }
 0x452   :  { %1451 = vmatpush3.bf16.msra.mxu0 %v1626_v5 }
 0x453   :  { %1471 = vmatpush3.bf16.msra.mxu1 %v1626_v5  ;;  %1452 = vmatprep.subr.bf16.mxu0 %v1565_v0 }
 0x454   :  { %1472 = vmatprep.subr.bf16.mxu1 %v1565_v0 }
 0x456   :  { %1453 = vmatpush3.bf16.msra.mxu0 %v1635_v6 }
 0x457   :  { %1473 = vmatpush3.bf16.msra.mxu1 %v1635_v6  ;;  %1454 = vmatprep.subr.bf16.mxu0 %v1565_v0 }
 0x458   :  { %1474 = vmatprep.subr.bf16.mxu1 %v1565_v0 }
 0x45a   :  { %1455 = vmatpush3.bf16.msra.mxu0 %v1644_v7 }
 0x45b   :  { %1475 = vmatpush3.bf16.msra.mxu1 %v1644_v7  ;;  %1456 = vmatprep.subr.bf16.mxu0 %v1565_v0 }
 0x45c   :  { %1476 = vmatprep.subr.bf16.mxu1 %v1565_v0 }
 0x45e   :  { %1457 = vmatpush3.bf16.msra.mxu0 %v1653_v8 }
 0x45f   :  { %1477 = vmatpush3.bf16.msra.mxu1 %v1653_v8  ;;  %1482 = vmatprep.subr.bf16.mxu0 %v1565_v0 }
 0x460   :  { %1502 = vmatprep.subr.bf16.mxu1 %v1565_v0 }
 0x501   :  { %v632_v48 = vpop.f32.mrf.mxu0 }
 0x502   :  { %v638_v49 = vadd.f32 %v1019_v46, %v632_v48  ;;  %v674_v50 = vpop.f32.mrf.mxu1 }
 0x503   :  { %v680_v51 = vadd.f32 %v1020_v47, %v674_v50  ;;  %v1420_v52 = vpop.f32.mrf.mxu0 }
 0x504   :  { %1553 = vtanh.f32 %v638_v49  ;;  %v1440_v53 = vpop.f32.mrf.mxu1 }
 0x505   :  { %1555 = vtanh.f32 %v680_v51  ;;  %v635_v54 = vpop.f32.mrf.mxu0 }
 0x506   :  { %v677_v55 = vpop.f32.mrf.mxu1 }
 0x507   :  { %v1421_v56 = vpop.f32.mrf.mxu0 }
 0x508   :  { %v1441_v57 = vpop.f32.mrf.mxu1 }
 0x511   :  { %v1554_v58 = vpop.eup %1553 }
 0x512   :  { %v1556_v59 = vpop.eup %1555  ;;  %v699_v60 = vpack.c.bf16 %v1554_v58, %v1554_v58 }
 0x513   :  { %v1024_v61 = vpack.c.bf16 %v1556_v59, %v1554_v58  ;;  %v741_v62 = vpack.c.bf16 %v1556_v59, %v1556_v59 }
 0x514   :  { %1459 = vmatmul.mubr.bf16.vlgmr.msra.gmra.mxu0 %v699_v60 }
 0x515   :  { %1053 = vst [vmem:[%s1961_s2 + $0x28] sm:$0xff] %v1024_v61   ;;  %1479 = vmatmul.mubr.bf16.vlgmr.msra.gmra.mxu1 %v741_v62  ;;  %1483 = vmatpush3.bf16.msra.mxu0 %v1588_v1 }
 0x516   :  { %1503 = vmatpush3.bf16.msra.mxu1 %v1588_v1  ;;  %1484 = vmatprep.subr.bf16.mxu0 %v1565_v0  ;;  %v1054_v1 = vld [vmem:[%s1960_s0 + $0x30] sm:$0xff]  }
 0x517   :  { %1504 = vmatprep.subr.bf16.mxu1 %v1565_v0  ;;  %1498 = vmatprep.mubr.msk.bf16.mxu0 %vm1566_vm0, %v1565_v0 }
 0x518   :  { %1518 = vmatprep.mubr.msk.bf16.mxu1 %vm1566_vm0, %v1565_v0 }
 0x519   :  { %1485 = vmatpush3.bf16.msra.mxu0 %v1599_v2 }
 0x51a   :  { %1505 = vmatpush3.bf16.msra.mxu1 %v1599_v2  ;;  %1486 = vmatprep.subr.bf16.mxu0 %v1565_v0  ;;  %v1028_v2 = vunpack.c.l.bf16 %v1054_v1 }
 0x51b   :  { %1506 = vmatprep.subr.bf16.mxu1 %v1565_v0 }
 0x51d   :  { %1487 = vmatpush3.bf16.msra.mxu0 %v1608_v3 }
 0x51e   :  { %1507 = vmatpush3.bf16.msra.mxu1 %v1608_v3  ;;  %1488 = vmatprep.subr.bf16.mxu0 %v1565_v0  ;;  %v1029_v3 = vunpack.c.h.bf16 %v1054_v1 }
 0x51f   :  { %1508 = vmatprep.subr.bf16.mxu1 %v1565_v0 }
 0x521   :  { %1489 = vmatpush3.bf16.msra.mxu0 %v1617_v4 }
 0x522   :  { %1509 = vmatpush3.bf16.msra.mxu1 %v1617_v4  ;;  %1490 = vmatprep.subr.bf16.mxu0 %v1565_v0 }
 0x523   :  { %1510 = vmatprep.subr.bf16.mxu1 %v1565_v0 }
 0x525   :  { %1491 = vmatpush3.bf16.msra.mxu0 %v1626_v5 }
 0x526   :  { %1511 = vmatpush3.bf16.msra.mxu1 %v1626_v5  ;;  %1492 = vmatprep.subr.bf16.mxu0 %v1565_v0 }
 0x527   :  { %1512 = vmatprep.subr.bf16.mxu1 %v1565_v0 }
 0x529   :  { %1493 = vmatpush3.bf16.msra.mxu0 %v1635_v6 }
 0x52a   :  { %1513 = vmatpush3.bf16.msra.mxu1 %v1635_v6  ;;  %1494 = vmatprep.subr.bf16.mxu0 %v1565_v0 }
 0x52b   :  { %1514 = vmatprep.subr.bf16.mxu1 %v1565_v0 }
 0x52d   :  { %1495 = vmatpush3.bf16.msra.mxu0 %v1644_v7 }
 0x52e   :  { %1515 = vmatpush3.bf16.msra.mxu1 %v1644_v7  ;;  %1496 = vmatprep.subr.bf16.mxu0 %v1565_v0 }
 0x52f   :  { %1516 = vmatprep.subr.bf16.mxu1 %v1565_v0 }
 0x531   :  { %1497 = vmatpush3.bf16.msra.mxu0 %v1653_v8 }
 0x532   :  { %1517 = vmatpush3.bf16.msra.mxu1 %v1653_v8 }
 0x5d4   :  { %v734_v4 = vpop.f32.mrf.mxu0 }
 0x5d5   :  { %v740_v5 = vadd.f32 %v1028_v2, %v734_v4  ;;  %v776_v6 = vpop.f32.mrf.mxu1 }
 0x5d6   :  { %v782_v63 = vadd.f32 %v1029_v3, %v776_v6  ;;  %v1460_v9 = vpop.f32.mrf.mxu0 }
 0x5d7   :  { %1557 = vtanh.f32 %v740_v5  ;;  %v1480_v7 = vpop.f32.mrf.mxu1 }
 0x5d8   :  { %1559 = vtanh.f32 %v782_v63  ;;  %v737_v10 = vpop.f32.mrf.mxu0 }
 0x5d9   :  { %v779_v0 = vpop.f32.mrf.mxu1 }
 0x5da   :  { %v1461_v11 = vpop.f32.mrf.mxu0 }
 0x5db   :  { %v1481_v12 = vpop.f32.mrf.mxu1 }
 0x5e4   :  { %v1558_v13 = vpop.eup %1557 }
 0x5e5   :  { %v1560_v8 = vpop.eup %1559  ;;  %v801_v14 = vpack.c.bf16 %v1558_v13, %v1558_v13 }
 0x5e6   :  { %v1033_v15 = vpack.c.bf16 %v1560_v8, %v1558_v13  ;;  %v843_v16 = vpack.c.bf16 %v1560_v8, %v1560_v8 }
 0x5e7   :  { %1499 = vmatmul.mubr.bf16.vlgmr.msra.gmra.mxu0 %v801_v14 }
 0x5e8   :  { %1055 = vst [vmem:[%s1961_s2 + $0x30] sm:$0xff] %v1033_v15   ;;  %1519 = vmatmul.mubr.bf16.vlgmr.msra.gmra.mxu1 %v843_v16 }
 0x6a7   :  { %v836_v20 = vpop.f32.mrf.mxu0 }
 0x6a8   :  { %v842_v21 = vadd.f32 %v1037_v18, %v836_v20  ;;  %v878_v22 = vpop.f32.mrf.mxu1 }
 0x6a9   :  { %v884_v23 = vadd.f32 %v1038_v19, %v878_v22  ;;  %v1500_v24 = vpop.f32.mrf.mxu0 }
 0x6aa   :  { %1561 = vtanh.f32 %v842_v21  ;;  %v1520_v25 = vpop.f32.mrf.mxu1 }
 0x6ab   :  { %1563 = vtanh.f32 %v884_v23  ;;  %v839_v26 = vpop.f32.mrf.mxu0 }
 0x6ac   :  { %v881_v27 = vpop.f32.mrf.mxu1 }
 0x6ad   :  { %v1501_v28 = vpop.f32.mrf.mxu0 }
 0x6ae   :  { %v1521_v29 = vpop.f32.mrf.mxu1 }
 0x6b7   :  { %v1562_v30 = vpop.eup %1561 }
 0x6b8   :  { %v1564_v31 = vpop.eup %1563 }
 0x6b9   :  { %v1042_v32 = vpack.c.bf16 %v1564_v31, %v1562_v30 }
 0x6bb   :  { %1057 = vst [vmem:[%s1961_s2 + $0x38] sm:$0xff] %v1042_v32  }

</bundles_post_ra>
